<compile_context>
chip_gen: v7x
topology: tpu7x:2x2x1
jax: 0.10.0
libtpu: 0.0.40
codegen_flags: <defaults>
</compile_context>

<pallas_src>
import functools

import jax
import jax.numpy as jnp
from jax.experimental import pallas as pl
from jax.experimental.pallas import tpu as pltpu

OUT_SIZE = 256   # hard-coded in the PyTorch module: F.interpolate(size=(256, 256))
_ROW_TILE = 128  # 2 grid steps -> one 128-row tile per v7x TensorCore


def _bilinear_matrix(out_size: int, in_size: int) -> jnp.ndarray:
    """Row-stochastic (out_size, in_size) matrix M s.t. M @ v is PyTorch's
    1-D bilinear resize with align_corners=False (half-pixel centers)."""
    scale = in_size / out_size
    dst = jnp.arange(out_size, dtype=jnp.float32)
    src = (dst + 0.5) * scale - 0.5
    src = jnp.clip(src, 0.0, float(in_size - 1))
    lo = jnp.floor(src).astype(jnp.int32)
    hi = jnp.minimum(lo + 1, in_size - 1)
    frac = src - lo.astype(jnp.float32)
    m_lo = jax.nn.one_hot(lo, in_size, dtype=jnp.float32) * (1.0 - frac)[:, None]
    m_hi = jax.nn.one_hot(hi, in_size, dtype=jnp.float32) * frac[:, None]
    return m_lo + m_hi


def _seg_kernel(ry_ref, x2_ref, s_ref, rxt_ref, out_ref, *, num_classes):
    """One 128-row output tile.

    ry_ref : (TM, Hp)   bf16  row-interp rows of this tile (zero-padded cols)
    x2_ref : (Hp, Kp)   bf16  X2[h, ci*W+wi] = x[ci,h,wi]; ones column at K-1; zero pad
    s_ref  : (NCp, Kp)  f32   S[c, ci*W+wi] = weight[c,ci]; S[c, K-1] = bias[c]
    rxt_ref: (Kp, 256)  bf16  RxT tiled per channel + ones row (class-independent)
    out_ref: (TM, 256)  int32 argmax class + 1
    """
    # MXU push #1 (shared by every class): row-upsample all channels + the ones column
    # (Ry rows sum to 1, so the ones column stays ~1 and carries the bias through).
    a = jnp.dot(ry_ref[...], x2_ref[...], preferred_element_type=jnp.float32)  # (TM, Kp) f32

    def class_logits(c):
        # Fold class-c conv weight & bias into A (f32 VPU scale), cast the MXU operand
        # to bf16, and column-upsample with the shared RxT.  Nothing of size
        # (TM, NC*256) is ever materialized.
        a_c = (a * s_ref[c:c + 1, :]).astype(jnp.bfloat16)                      # (TM, Kp) bf16
        return jnp.dot(a_c, rxt_ref[...], preferred_element_type=jnp.float32)  # (TM, 256) f32

    # Running argmax, seeded from class 0; later classes win only on strict '>'
    # (torch.argmax first-max tie-break).  Stored index is already class+1.
    best_val = class_logits(0)
    best_idx = jnp.ones(out_ref.shape, dtype=jnp.int32)
    for c in range(1, num_classes):          # NC is small & static -> unrolled
        v = class_logits(c)
        take = v > best_val
        best_idx = jnp.where(take, jnp.int32(c + 1), best_idx)
        best_val = jnp.where(take, v, best_val)

    out_ref[...] = best_idx


@jax.jit
def mymodel_forward(x_nchw, weight, bias):
    """x_nchw: (1, C, H, W) f32; weight: (NC, C) f32; bias: (NC,) f32.
    Returns (256, 256) int32 = argmax over classes of the upsampled logits, + 1."""
    assert x_nchw.shape[0] == 1, "module squeezes the batch dim: batch must be 1"
    num_classes = weight.shape[0]
    assert num_classes >= 1
    x = x_nchw[0].astype(jnp.float32)
    c_in, h, w = x.shape
    assert weight.shape == (num_classes, c_in) and bias.shape == (num_classes,)

    # 1-D bilinear resize matrices (PyTorch align_corners=False semantics).
    ry = _bilinear_matrix(OUT_SIZE, h)        # (256, H)
    rxt = _bilinear_matrix(OUT_SIZE, w).T     # (W, 256)

    # Pad contraction dims to multiples of 128 so every MXU operand is lane-dense.
    k = c_in * w + 1                          # +1: ones column that carries the bias
    k_pad = ((k + 127) // 128) * 128
    h_pad = ((h + 127) // 128) * 128
    nc_pad = ((num_classes + 7) // 8) * 8

    # Ry, zero-padded on its H axis, bf16 MXU operand.
    ry_p = jnp.pad(ry, ((0, 0), (0, h_pad - h))).astype(jnp.bfloat16)            # (256, Hp)

    # X2[hh, ci*W+wi] = x[ci, hh, wi]; ones column at K-1 (padded rows are zero).
    x2 = jnp.transpose(x, (1, 0, 2)).reshape(h, c_in * w)
    x2 = jnp.concatenate([x2, jnp.ones((h, 1), jnp.float32)], axis=1)            # (H, K)
    x2 = jnp.pad(x2, ((0, h_pad - h), (0, k_pad - k))).astype(jnp.bfloat16)      # (Hp, Kp)

    # Tiny per-class scale matrix (kept f32 for accuracy):
    #   S[c, ci*W+wi] = weight[c, ci],  S[c, K-1] = bias[c].
    s = jnp.concatenate([jnp.repeat(weight, w, axis=1), bias[:, None]], axis=1)  # (NC, K)
    s = jnp.pad(s, ((0, nc_pad - num_classes), (0, k_pad - k)))                  # (NCp, Kp)

    # Shared column-interp operand: RxT tiled once per channel + ones row for the bias.
    rxt_big = jnp.concatenate(
        [jnp.tile(rxt, (c_in, 1)), jnp.ones((1, OUT_SIZE), jnp.float32)], axis=0)
    rxt_big = jnp.pad(rxt_big, ((0, k_pad - k), (0, 0))).astype(jnp.bfloat16)    # (Kp, 256)

    grid = (OUT_SIZE // _ROW_TILE,)   # 2 row tiles -> megacore-parallel on v7x

    flops = 2 * OUT_SIZE * k_pad * (h_pad + num_classes * OUT_SIZE)
    bytes_accessed = ((ry_p.size + x2.size + rxt_big.size) * 2 + s.size * 4
                      + OUT_SIZE * OUT_SIZE * 4)

    return pl.pallas_call(
        functools.partial(_seg_kernel, num_classes=num_classes),
        out_shape=jax.ShapeDtypeStruct((OUT_SIZE, OUT_SIZE), jnp.int32),
        grid=grid,
        in_specs=[
            pl.BlockSpec((_ROW_TILE, h_pad), lambda i: (i, 0)),   # Ry rows of this tile
            pl.BlockSpec((h_pad, k_pad), lambda i: (0, 0)),       # X2      (replicated)
            pl.BlockSpec((nc_pad, k_pad), lambda i: (0, 0)),      # S       (replicated)
            pl.BlockSpec((k_pad, OUT_SIZE), lambda i: (0, 0)),    # RxT_big (replicated)
        ],
        out_specs=pl.BlockSpec((_ROW_TILE, OUT_SIZE), lambda i: (i, 0)),
        compiler_params=pltpu.CompilerParams(dimension_semantics=("parallel",)),
        cost_estimate=pl.CostEstimate(flops=flops, transcendentals=0,
                                      bytes_accessed=bytes_accessed),
    )(ry_p, x2, s, rxt_big)


if __name__ == "__main__":
    key = jax.random.PRNGKey(0)
    k_x, k_w, k_b = jax.random.split(key, 3)

    # Module-consistent small shapes: batch=1 (squeeze + argmax(dim=0) require it),
    # 4 input channels (HRNet variant normalizes 4 channels), 16x16 spatial, 5 classes.
    batch, c_in, h, w = 1, 4, 16, 16
    num_classes = 5

    x = jax.random.normal(k_x, (batch, c_in, h, w), dtype=jnp.float32)
    weight = jax.random.normal(k_w, (num_classes, c_in), dtype=jnp.float32)
    bias = jax.random.normal(k_b, (num_classes,), dtype=jnp.float32) * 0.1

    pred = mymodel_forward(x, weight, bias)
    jax.block_until_ready(pred)

    assert pred.shape == (OUT_SIZE, OUT_SIZE)
    assert pred.dtype == jnp.int32
    assert int(pred.min()) >= 1 and int(pred.max()) <= num_classes

    # Pure-f32 JAX reference of the same forward (conv -> bilinear -> argmax + 1).
    ry_r = _bilinear_matrix(OUT_SIZE, h)
    rx_r = _bilinear_matrix(OUT_SIZE, w)
    logits = jnp.einsum('nc,chw->nhw', weight, x[0]) + bias[:, None, None]
    up_ref = jnp.einsum('oh,nhw,jw->noj', ry_r, logits, rx_r)       # (NC, 256, 256) f32
    ref = (jnp.argmax(up_ref, axis=0) + 1).astype(jnp.int32)

    # argmax is only defined up to numerical noise at near-ties; with bf16 MXU
    # operands (accepted per perf review) pixels whose top-2 logits nearly coincide
    # may flip.  Require exact agreement wherever the decision is numerically
    # decisive, and only a small flip fraction overall.
    top2 = jnp.sort(up_ref, axis=0)[-2:]
    gap = top2[1] - top2[0]                                          # top1 - top2 margin
    mism = pred != ref
    wrong_decisive = int(jnp.sum(mism & (gap > 0.5)))
    total_mism = int(jnp.sum(mism))
    assert wrong_decisive == 0, f"{wrong_decisive} decisive pixels disagree with reference"
    assert total_mism <= int(0.05 * OUT_SIZE * OUT_SIZE), f"too many mismatches: {total_mism}"

    print("KERNEL_OK")
</pallas_src>

<mosaic_0001>
module attributes {stable_mosaic.version = 11 : i64} {
  func.func @_seg_kernel(%arg0: i32, %arg1: memref<128x128xbf16, #tpu.memory_space<vmem>>, %arg2: memref<128x128xbf16, #tpu.memory_space<vmem>>, %arg3: memref<8x128xf32, #tpu.memory_space<vmem>>, %arg4: memref<128x256xbf16, #tpu.memory_space<vmem>>, %arg5: memref<128x256xi32, #tpu.memory_space<vmem>>) attributes {dimension_semantics = [#tpu.dimension_semantics<parallel>], iteration_bounds = array<i64: 2>, scalar_prefetch = 0 : i64, scratch_operands = 0 : i64, tpu.core_type = #tpu.core_type<tc>, window_params = [{transform_indices = @transform_0, window_bounds = array<i64: 128, 128>}, {pipeline_mode = #tpu.pipeline_mode<synchronous>, transform_indices = @transform_1, window_bounds = array<i64: 128, 128>}, {pipeline_mode = #tpu.pipeline_mode<synchronous>, transform_indices = @transform_2, window_bounds = array<i64: 8, 128>}, {pipeline_mode = #tpu.pipeline_mode<synchronous>, transform_indices = @transform_3, window_bounds = array<i64: 128, 256>}, {transform_indices = @transform_4, window_bounds = array<i64: 128, 256>}]} {
    %c0 = arith.constant 0 : index
    %c0_0 = arith.constant 0 : index
    %0 = vector.load %arg1[%c0, %c0_0] : memref<128x128xbf16, #tpu.memory_space<vmem>>, vector<128x128xbf16>
    %c0_1 = arith.constant 0 : index
    %c0_2 = arith.constant 0 : index
    %1 = vector.load %arg2[%c0_1, %c0_2] : memref<128x128xbf16, #tpu.memory_space<vmem>>, vector<128x128xbf16>
    %cst = arith.constant dense<0.000000e+00> : vector<128x128xf32>
    %2 = tpu.matmul %0, %1, %cst {dimension_numbers = #tpu.dot_dimension_numbers<[1], [0], [0], [1], [0, 0, 1, 1], [], []>} : vector<128x128xbf16>, vector<128x128xbf16>, vector<128x128xf32> -> vector<128x128xf32>
    %c0_3 = arith.constant 0 : index
    %c0_4 = arith.constant 0 : index
    %3 = vector.load %arg3[%c0_3, %c0_4] : memref<8x128xf32, #tpu.memory_space<vmem>>, vector<1x128xf32>
    %4 = vector.broadcast %3 : vector<1x128xf32> to vector<128x128xf32>
    %5 = arith.mulf %2, %4 : vector<128x128xf32>
    %6 = arith.truncf %5 : vector<128x128xf32> to vector<128x128xbf16>
    %c0_5 = arith.constant 0 : index
    %c0_6 = arith.constant 0 : index
    %7 = vector.load %arg4[%c0_5, %c0_6] : memref<128x256xbf16, #tpu.memory_space<vmem>>, vector<128x256xbf16>
    %cst_7 = arith.constant dense<0.000000e+00> : vector<128x256xf32>
    %8 = tpu.matmul %6, %7, %cst_7 {dimension_numbers = #tpu.dot_dimension_numbers<[1], [0], [0], [1], [0, 0, 1, 1], [], []>} : vector<128x128xbf16>, vector<128x256xbf16>, vector<128x256xf32> -> vector<128x256xf32>
    %c1_i32 = arith.constant 1 : i32
    %9 = vector.broadcast %c1_i32 : i32 to vector<128x256xi32>
    %c1 = arith.constant 1 : index
    %c0_8 = arith.constant 0 : index
    %10 = vector.load %arg3[%c1, %c0_8] : memref<8x128xf32, #tpu.memory_space<vmem>>, vector<1x128xf32>
    %11 = vector.broadcast %10 : vector<1x128xf32> to vector<128x128xf32>
    %12 = arith.mulf %2, %11 : vector<128x128xf32>
    %13 = arith.truncf %12 : vector<128x128xf32> to vector<128x128xbf16>
    %c0_9 = arith.constant 0 : index
    %c0_10 = arith.constant 0 : index
    %14 = vector.load %arg4[%c0_9, %c0_10] : memref<128x256xbf16, #tpu.memory_space<vmem>>, vector<128x256xbf16>
    %cst_11 = arith.constant dense<0.000000e+00> : vector<128x256xf32>
    %15 = tpu.matmul %13, %14, %cst_11 {dimension_numbers = #tpu.dot_dimension_numbers<[1], [0], [0], [1], [0, 0, 1, 1], [], []>} : vector<128x128xbf16>, vector<128x256xbf16>, vector<128x256xf32> -> vector<128x256xf32>
    %16 = arith.cmpf ogt, %15, %8 : vector<128x256xf32>
    %c2_i32 = arith.constant 2 : i32
    %17 = vector.broadcast %c2_i32 : i32 to vector<128x256xi32>
    %18 = arith.select %16, %17, %9 : vector<128x256xi1>, vector<128x256xi32>
    %19 = arith.select %16, %15, %8 : vector<128x256xi1>, vector<128x256xf32>
    %c2 = arith.constant 2 : index
    %c0_12 = arith.constant 0 : index
    %20 = vector.load %arg3[%c2, %c0_12] : memref<8x128xf32, #tpu.memory_space<vmem>>, vector<1x128xf32>
    %21 = vector.broadcast %20 : vector<1x128xf32> to vector<128x128xf32>
    %22 = arith.mulf %2, %21 : vector<128x128xf32>
    %23 = arith.truncf %22 : vector<128x128xf32> to vector<128x128xbf16>
    %c0_13 = arith.constant 0 : index
    %c0_14 = arith.constant 0 : index
    %24 = vector.load %arg4[%c0_13, %c0_14] : memref<128x256xbf16, #tpu.memory_space<vmem>>, vector<128x256xbf16>
    %cst_15 = arith.constant dense<0.000000e+00> : vector<128x256xf32>
    %25 = tpu.matmul %23, %24, %cst_15 {dimension_numbers = #tpu.dot_dimension_numbers<[1], [0], [0], [1], [0, 0, 1, 1], [], []>} : vector<128x128xbf16>, vector<128x256xbf16>, vector<128x256xf32> -> vector<128x256xf32>
    %26 = arith.cmpf ogt, %25, %19 : vector<128x256xf32>
    %c3_i32 = arith.constant 3 : i32
    %27 = vector.broadcast %c3_i32 : i32 to vector<128x256xi32>
    %28 = arith.select %26, %27, %18 : vector<128x256xi1>, vector<128x256xi32>
    %29 = arith.select %26, %25, %19 : vector<128x256xi1>, vector<128x256xf32>
    %c3 = arith.constant 3 : index
    %c0_16 = arith.constant 0 : index
    %30 = vector.load %arg3[%c3, %c0_16] : memref<8x128xf32, #tpu.memory_space<vmem>>, vector<1x128xf32>
    %31 = vector.broadcast %30 : vector<1x128xf32> to vector<128x128xf32>
    %32 = arith.mulf %2, %31 : vector<128x128xf32>
    %33 = arith.truncf %32 : vector<128x128xf32> to vector<128x128xbf16>
    %c0_17 = arith.constant 0 : index
    %c0_18 = arith.constant 0 : index
    %34 = vector.load %arg4[%c0_17, %c0_18] : memref<128x256xbf16, #tpu.memory_space<vmem>>, vector<128x256xbf16>
    %cst_19 = arith.constant dense<0.000000e+00> : vector<128x256xf32>
    %35 = tpu.matmul %33, %34, %cst_19 {dimension_numbers = #tpu.dot_dimension_numbers<[1], [0], [0], [1], [0, 0, 1, 1], [], []>} : vector<128x128xbf16>, vector<128x256xbf16>, vector<128x256xf32> -> vector<128x256xf32>
    %36 = arith.cmpf ogt, %35, %29 : vector<128x256xf32>
    %c4_i32 = arith.constant 4 : i32
    %37 = vector.broadcast %c4_i32 : i32 to vector<128x256xi32>
    %38 = arith.select %36, %37, %28 : vector<128x256xi1>, vector<128x256xi32>
    %39 = arith.select %36, %35, %29 : vector<128x256xi1>, vector<128x256xf32>
    %c4 = arith.constant 4 : index
    %c0_20 = arith.constant 0 : index
    %40 = vector.load %arg3[%c4, %c0_20] : memref<8x128xf32, #tpu.memory_space<vmem>>, vector<1x128xf32>
    %41 = vector.broadcast %40 : vector<1x128xf32> to vector<128x128xf32>
    %42 = arith.mulf %2, %41 : vector<128x128xf32>
    %43 = arith.truncf %42 : vector<128x128xf32> to vector<128x128xbf16>
    %c0_21 = arith.constant 0 : index
    %c0_22 = arith.constant 0 : index
    %44 = vector.load %arg4[%c0_21, %c0_22] : memref<128x256xbf16, #tpu.memory_space<vmem>>, vector<128x256xbf16>
    %cst_23 = arith.constant dense<0.000000e+00> : vector<128x256xf32>
    %45 = tpu.matmul %43, %44, %cst_23 {dimension_numbers = #tpu.dot_dimension_numbers<[1], [0], [0], [1], [0, 0, 1, 1], [], []>} : vector<128x128xbf16>, vector<128x256xbf16>, vector<128x256xf32> -> vector<128x256xf32>
    %46 = arith.cmpf ogt, %45, %39 : vector<128x256xf32>
    %c5_i32 = arith.constant 5 : i32
    %47 = vector.broadcast %c5_i32 : i32 to vector<128x256xi32>
    %48 = arith.select %46, %47, %38 : vector<128x256xi1>, vector<128x256xi32>
    %c0_24 = arith.constant 0 : index
    %c0_25 = arith.constant 0 : index
    %49 = vector.load %arg5[%c0_24, %c0_25] : memref<128x256xi32, #tpu.memory_space<vmem>>, vector<128x256xi32>
    tpu.vector_store %arg5[%c0_24, %c0_25], %48 {strides = array<i32>} : memref<128x256xi32, #tpu.memory_space<vmem>>, vector<128x256xi32>,
    return
  }
  func.func @transform_0(%arg0: i32) -> (i32, i32) {
    %c0_i32 = arith.constant 0 : i32
    %c0_i32_0 = arith.constant 0 : i32
    return %arg0, %c0_i32 : i32, i32
  }
  func.func @transform_1(%arg0: i32) -> (i32, i32) {
    %c0_i32 = arith.constant 0 : i32
    %c0_i32_0 = arith.constant 0 : i32
    %c0_i32_1 = arith.constant 0 : i32
    return %c0_i32, %c0_i32_0 : i32, i32
  }
  func.func @transform_2(%arg0: i32) -> (i32, i32) {
    %c0_i32 = arith.constant 0 : i32
    %c0_i32_0 = arith.constant 0 : i32
    %c0_i32_1 = arith.constant 0 : i32
    return %c0_i32, %c0_i32_0 : i32, i32
  }
  func.func @transform_3(%arg0: i32) -> (i32, i32) {
    %c0_i32 = arith.constant 0 : i32
    %c0_i32_0 = arith.constant 0 : i32
    %c0_i32_1 = arith.constant 0 : i32
    return %c0_i32, %c0_i32_0 : i32, i32
  }
  func.func @transform_4(%arg0: i32) -> (i32, i32) {
    %c0_i32 = arith.constant 0 : i32
    %c0_i32_0 = arith.constant 0 : i32
    return %arg0, %c0_i32 : i32, i32
  }
}

</mosaic_0001>

<bundles_post_ra>
// kernel: mymodel_forward.1
= control target key start
LH: loop header
LB: loop body
LE: loop exit
PB: predicated region body
PF: predicated region fallthrough
CT: control target
= control target key end

     0   :  { %9 = vsyncpa [#allocation3], 0  ;;  %s3620_s0 = inlined_call_operand.vmem [shape: bf16[256,128], index: 0, kind: input, shape index: {}]   ;;  %s3621_s1 = inlined_call_operand.vmem [shape: bf16[128,128], index: 1, kind: input, shape index: {}]   ;;  %s3622_s2 = inlined_call_operand.vmem [shape: f32[8,128], index: 2, kind: input, shape index: {}]   ;;  %s3623_s3 = inlined_call_operand.vmem [shape: bf16[128,256], index: 3, kind: input, shape index: {}]   ;;  %s3624_s4 = inlined_call_operand.hbm [shape: s32[256,256], index: 4, kind: output, shape index: {}]  }
   0x1   :  { %11 = vsyncpa [#allocation3 + $0x1], 0  ;;  %s1985_s15 = smov 0   ;;  %s1987_s16 = smov 0  }
   0x2   :  { %s1989_s17 = smov 0   ;;  %s1991_s18 = smov 0  }
   0x3 LB: > { %s2006_s19 = sadd.s32 4294967295, %s1953_s18   ;;  %s1692_s20 = sadd.s32 4294967294, %s1953_s18   ;;  %s1953_s18 = sphi %s1991_s18, %s3952_s18   ;;  %s1949_s17 = sphi %s1989_s17, %s3951_s17   ;;  %s1945_s16 = sphi %s1987_s16, %s3950_s16   ;;  %s1941_s15 = sphi %s1985_s15, %s3949_s15  }
   0x4   : > { %s2010_s21 = sadd.s32 1, %s1953_s18   ;;  %s113_s22 = sadd.s32 1, %s1949_s17 }
   0x5   : > { %s110_s23 = ssub.s32 %s1953_s18, %s2010_s21  ;;  %p123_p0 = scmp.ne.s32.totalorder %s1949_s17, %s1945_s16 }
   0x6   : > { %p111_p1 = scmp.eq.s32.totalorder %s110_s23, 0  ;;  %p124_p2 = scmp.eq.s32.totalorder %s2006_s19, 1 }
   0x7   : > { %p129_p3 = scmp.ne.s32.totalorder %s1945_s16, %s1941_s15  ;;  %p130_p4 = scmp.eq.s32.totalorder %s1692_s20, 1 }
   0x8   : > { %s2021_s24 = scalar_select %p111_p1, %s1949_s17, %s113_s22  }
   0x9   : > { %p2023_p5 = por %p124_p2, %p123_p0  ;;  %p2027_p6 = por %p130_p4, %p129_p3 }
   0xa   : > { %p1695_p7 = scmp.ge.s32.totalorder %s1953_s18, 1  ;;  %p166_p8 = scmp.lt.s32.totalorder %s1953_s18, 3 }
   0xc   : > { %p167_p9 = pnand %p1695_p7, %p166_p8 }
   0xe   : > { %170 = sbr.rel (%p167_p9) target bundleno = 676 (0x2a4), region = 36 }
  0x15   : > { %v1851_v0 = vld [vmem:[%s3621_s1] sm:$0xff]   ;;  %s1697_s29 = sshll.u32 %s2006_s19, 4  ;;  %v1852_v1 = vld [vmem:[%s3621_s1 + $0x8] sm:$0xff]   ;;  %v1853_v2 = vld [vmem:[%s3621_s1 + $0x10] sm:$0xff]   ;;  %v3625_v32 = vmov 0   ;;  %s189_s20 = sand.u32 1, %s1945_s16  }
  0x16   : > { %p193_p10 = scmp.lt.s32.totalorder %s1697_s29, 31  ;;  %1760 = vmatprep.subr.bf16.mxu0 %v1851_v0  ;;  %v1854_v3 = vld [vmem:[%s3621_s1 + $0x18] sm:$0xff]   ;;  %v1855_v5 = vld [vmem:[%s3621_s1 + $0x20] sm:$0xff]   ;;  %v1856_v6 = vld [vmem:[%s3621_s1 + $0x28] sm:$0xff]   ;;  %582 = vmatprep.mubr.bf16.mxu1 %v3625_v32  ;;  %s1696_s22 = sshll.u32 %s189_s20, 8 }
  0x17   : > { %1761 = vmatpush3.bf16.msra.mxu0 %v1851_v0  ;;  %v2061_v7 = vld [vmem:[%s3623_s3 + $0x4] ss:$8 sps:$4 sm:$0xff]   ;;  %v2066_v8 = vld [vmem:[%s3623_s3] ss:$8 sps:$4 sm:$0xff]   ;;  %v2072_v9 = vld [vmem:[%s3623_s3 + $0x14] ss:$8 sps:$4 sm:$0xff]  }
  0x18   : > { %s3954_s29 = smov (!%p193_p10, %s1697_s29), 31  ;;  %1762 = vmatprep.subr.bf16.mxu0 %v1852_v1  ;;  %550 = vmatprep.subr.bf16.mxu1 %v2061_v7  ;;  %v1857_v10 = vld [vmem:[%s3621_s1 + $0x30] sm:$0xff]   ;;  %v2087_v12 = vld [vmem:[%s3623_s3 + $0x24] ss:$8 sps:$4 sm:$0xff]   ;;  %v1858_v13 = vld [vmem:[%s3621_s1 + $0x38] sm:$0xff]   ;;  %s3474_s23 = scalar_lea.vmem [#allocation2], %s1696_s22 }
  0x19   : > { %s1698_s8 = sshll.u32 %s3954_s29, 2  ;;  %551 = vmatpush1.bf16.msra.mxu1 %v2066_v8  ;;  %v2081_v11 = vld [vmem:[%s3623_s3 + $0x10] ss:$8 sps:$4 sm:$0xff]   ;;  %v2096_v14 = vld [vmem:[%s3623_s3 + $0x20] ss:$8 sps:$4 sm:$0xff]   ;;  %s1743_s27 = sshll.u32 %s2006_s19, 12 }
  0x1a   : > { %s2046_s11 = scalar_lea.vmem %s3620_s0, %s1698_s8  ;;  %552 = vmatprep.subr.bf16.mxu1 %v2072_v9  ;;  %3729 = vst [vmem:[#allocation5_spill] sm:$0xff] %v2096_v14  ;;  %v2102_v15 = vld [vmem:[%s3623_s3 + $0x34] ss:$8 sps:$4 sm:$0xff]   ;;  %v2108_v16 = vld [vmem:[%s3623_s3 + $0x30] ss:$8 sps:$4 sm:$0xff]   ;;  %s1630_s28 = sshll.u32 %s3474_s23, 4  ;;  %s3569_s28 = int_to_ptr.vmem [resolvable:$true] %s1630_s28 }
  0x1b   : > { %1763 = vmatpush3.bf16.msra.mxu0 %v1852_v1  ;;  %v1859_v4 = vld [vmem:[%s2046_s11] sm:$0xff]   ;;  %3730 = vst [vmem:[#allocation6_spill] sm:$0xff] %v2102_v15  ;;  %3731 = vst [vmem:[#allocation7_spill] sm:$0xff] %v2108_v16  ;;  %v1860_v18 = vld [vmem:[%s2046_s11 + $0x8] sm:$0xff]   ;;  %s3567_s29 = scalar_lea.hbm %s3624_s4, %s1743_s27  ;;  %s3579_s30 = scalar_lea.sflag [#allocation3], %s189_s20 }
  0x1c   : > { %1764 = vmatprep.subr.bf16.mxu0 %v1853_v2  ;;  %1776 = vmatprep.mubr.bf16.mxu0 %v1859_v4  ;;  %v2114_v17 = vld [vmem:[%s3623_s3 + $0x44] ss:$8 sps:$4 sm:$0xff]   ;;  %v1861_v19 = vld [vmem:[%s2046_s11 + $0x10] sm:$0xff]   ;;  %v2124_v20 = vld [vmem:[%s3623_s3 + $0x40] ss:$8 sps:$4 sm:$0xff]   ;;  %s1891_s5 = scalar_lea.vmem %s3569_s28, 4096 }
  0x1d   : > { %553 = vmatpush1.bf16.msra.mxu1 %v2081_v11  ;;  %3732 = vst [vmem:[#allocation8_spill] sm:$0xff] %v2114_v17  ;;  %3733 = vst [vmem:[#allocation9_spill] sm:$0xff] %v2124_v20  ;;  %v2129_v21 = vld [vmem:[%s3623_s3 + $0x54] ss:$8 sps:$4 sm:$0xff]   ;;  %v2137_v22 = vld [vmem:[%s3623_s3 + $0x50] ss:$8 sps:$4 sm:$0xff]   ;;  %p1892_p11 = scmp.ne.s32.totalorder %s3569_s28, %s1891_s5 }
  0x1e   : > { %554 = vmatprep.subr.bf16.mxu1 %v2087_v12  ;;  %3734 = vst [vmem:[#allocation10_spill] sm:$0xff] %v2129_v21  ;;  %v2143_v23 = vld [vmem:[%s3623_s3 + $0x64] ss:$8 sps:$4 sm:$0xff]   ;;  %v1862_v24 = vld [vmem:[%s2046_s11 + $0x18] sm:$0xff]   ;;  %v1865_v27 = vld [vmem:[%s2046_s11 + $0x30] sm:$0xff]   ;;  %s1957_s6 = smov [#allocation2]  }
  0x1f   : > { %1765 = vmatpush3.bf16.msra.mxu0 %v1853_v2  ;;  %v1863_v25 = vld [vmem:[%s2046_s11 + $0x20] sm:$0xff]   ;;  %v1864_v26 = vld [vmem:[%s2046_s11 + $0x28] sm:$0xff]   ;;  %v1866_v28 = vld [vmem:[%s2046_s11 + $0x38] sm:$0xff]   ;;  %p1893_p12 = pnand %p1892_p11, %p2023_p5  ;;  %s1895_s7 = sshll.u32 %s1957_s6, 4  ;;  %s1896_s7 = int_to_ptr.vmem [resolvable:$false] %s1895_s7 }
  0x20   : > { %1766 = vmatprep.subr.bf16.mxu0 %v1854_v3  ;;  %v2165_v29 = vld [vmem:[%s3623_s3 + $0x60] ss:$8 sps:$4 sm:$0xff]   ;;  %v2172_v30 = vld [vmem:[%s3623_s3 + $0x74] ss:$8 sps:$4 sm:$0xff]   ;;  %v2177_v31 = vld [vmem:[%s3623_s3 + $0x70] ss:$8 sps:$4 sm:$0xff]   ;;  %p1898_p0 = scmp.lt.s32.totalorder %s3569_s28, %s1896_s7 }
  0x21   : > { %555 = vmatpush1.bf16.msra.mxu1 %v2096_v14  ;;  %v2190_v33 = vld [vmem:[%s3622_s2 + $0x1] ss:$0 sm:$0xff]  ;;  %v2195_v34 = vld [vmem:[%s3622_s2 + $0x2] ss:$0 sm:$0xff]  ;;  %v2200_v35 = vld [vmem:[%s3622_s2] ss:$0 sm:$0xff]  ;;  %p1894_p13 = pneg %p1893_p12 }
  0x22   : > { %556 = vmatprep.subr.bf16.mxu1 %v2102_v15  ;;  %v2205_v36 = vld [vmem:[%s3622_s2 + $0x3] ss:$0 sm:$0xff]  ;;  %v2210_v37 = vld [vmem:[%s3622_s2 + $0x4] ss:$0 sm:$0xff]  ;;  %s1897_s8 = scalar_lea.vmem %s1896_s7, 8192 }
  0x23   : > { %1767 = vmatpush3.bf16.msra.mxu0 %v1854_v3  ;;  %p1899_p1 = scmp.lt.s32.totalorder %s1897_s8, %s1891_s5 }
  0x24   : > { %1768 = vmatprep.subr.bf16.mxu0 %v1855_v5 }
  0x25   : > { %557 = vmatpush1.bf16.msra.mxu1 %v2108_v16  ;;  %p1900_p2 = por %p1899_p1, %p1898_p0 }
  0x26   : > { %558 = vmatprep.subr.bf16.mxu1 %v2114_v17 }
  0x27   : > { %1769 = vmatpush3.bf16.msra.mxu0 %v1855_v5  ;;  %p1901_p3 = pnand %p1900_p2, %p1894_p13 }
  0x28   : > { %1770 = vmatprep.subr.bf16.mxu0 %v1856_v6 }
  0x29   : > { %559 = vmatpush1.bf16.msra.mxu1 %v2124_v20 }
  0x2a   : > { %560 = vmatprep.subr.bf16.mxu1 %v2129_v21 }
  0x2b   : > { %1771 = vmatpush3.bf16.msra.mxu0 %v1856_v6 }
  0x2c   : > { %1772 = vmatprep.subr.bf16.mxu0 %v1857_v10 }
  0x2d   : > { %561 = vmatpush1.bf16.msra.mxu1 %v2137_v22 }
  0x2e   : > { %562 = vmatprep.subr.bf16.mxu1 %v2143_v23 }
  0x2f   : > { %1773 = vmatpush3.bf16.msra.mxu0 %v1857_v10 }
  0x30   : > { %1774 = vmatprep.subr.bf16.mxu0 %v1858_v13 }
  0x31   : > { %563 = vmatpush1.bf16.msra.mxu1 %v2165_v29 }
  0x32   : > { %564 = vmatprep.subr.bf16.mxu1 %v2172_v30 }
  0x33   : > { %1775 = vmatpush3.bf16.msra.mxu0 %v1858_v13 }
  0x34   : > { %692 = vmatprep.subr.bf16.mxu0 %v2061_v7 }
  0x35   : > { %565 = vmatpush1.bf16.msra.mxu1 %v2177_v31 }
  0x36   : > { %1777 = vmatmul.mubr.bf16.vlgmr.msra.gmra.mrb[0].mxu0 %v1860_v18  ;;  %930 = vmatprep.subr.bf16.mxu1 %v2061_v7 }
  0x37   : > { %1780 = vmatprep.mubr.bf16.mxu0 %v1861_v19  ;;  %693 = vmatpush1.bf16.msra.mxu0 %v2066_v8 }
  0x38   : > { %694 = vmatprep.subr.bf16.mxu0 %v2072_v9 }
  0x3b   : > { %695 = vmatpush1.bf16.msra.mxu0 %v2081_v11 }
  0x3c   : > { %696 = vmatprep.subr.bf16.mxu0 %v2087_v12 }
  0x3e   : > { %1781 = vmatmul.mubr.bf16.gmra.mrb[4].mxu0 %v1862_v24 }
  0x3f   : > { %1784 = vmatprep.mubr.bf16.mxu0 %v1863_v25  ;;  %697 = vmatpush1.bf16.msra.mxu0 %v2096_v14 }
  0x40   : > { %698 = vmatprep.subr.bf16.mxu0 %v2102_v15 }
  0x43   : > { %699 = vmatpush1.bf16.msra.mxu0 %v2108_v16 }
  0x44   : > { %700 = vmatprep.subr.bf16.mxu0 %v2114_v17 }
  0x46   : > { %1785 = vmatmul.mubr.bf16.gmra.mrb[8].mxu0 %v1864_v26 }
  0x47   : > { %1788 = vmatprep.mubr.bf16.mxu0 %v1865_v27  ;;  %701 = vmatpush1.bf16.msra.mxu0 %v2124_v20 }
  0x48   : > { %702 = vmatprep.subr.bf16.mxu0 %v2129_v21 }
  0x4b   : > { %703 = vmatpush1.bf16.msra.mxu0 %v2137_v22 }
  0x4c   : > { %704 = vmatprep.subr.bf16.mxu0 %v2143_v23 }
  0x4e   : > { %1789 = vmatmul.mubr.bf16.gmra.mrb[12].mxu0 %v1866_v28 }
  0x4f   : > { %705 = vmatpush1.bf16.msra.mxu0 %v2165_v29  ;;  %724 = vmatprep.mubr.bf16.mxu0 %v3625_v32 }
  0x50   : > { %706 = vmatprep.subr.bf16.mxu0 %v2172_v30 }
  0x53   : > { %707 = vmatpush1.bf16.msra.mxu0 %v2177_v31 }
  0x54   : > { %1168 = vmatprep.subr.bf16.mxu0 %v2061_v7 }
 0x109   : > { %v1778_v38 = vpop.f32.mrb[0].mxu0 }
 0x10a   : > { %v362_v39 = vpop.f32.mrb[1].mxu0  ;;  %v2213_v40 = vmul.f32 %v1778_v38, %v2200_v35  ;;  %v2216_v41 = vmul.f32 %v1778_v38, %v2190_v33  ;;  %v2219_v42 = vmul.f32 %v1778_v38, %v2195_v34  ;;  %v2262_v2 = vmul.f32 %v1778_v38, %v2205_v36 }
 0x10b   : > { %v668_v43 = vmul.f32 %v2190_v33, %v362_v39  ;;  %v2223_v44 = vmul.f32 %v2195_v34, %v362_v39  ;;  %v2226_v45 = vmul.f32 %v2205_v36, %v362_v39  ;;  %v2229_v46 = vmul.f32 %v2210_v37, %v362_v39  ;;  %v1779_v47 = vpop.f32.mrb[2].mxu0 }
 0x10c   : > { %v365_v48 = vpop.f32.mrb[3].mxu0  ;;  %v430_v49 = vmul.f32 %v2200_v35, %v362_v39  ;;  %v2233_v50 = vmul.f32 %v1779_v47, %v2200_v35  ;;  %v671_v51 = vmul.f32 %v1779_v47, %v2190_v33  ;;  %v2237_v52 = vmul.f32 %v1779_v47, %v2195_v34 }
 0x10d   : > { %3735 = vst [vmem:[#allocation11_spill] sm:$0xff] %v2229_v46  ;;  %v669_v53 = vmul.f32 %v2190_v33, %v365_v48  ;;  %v2241_v54 = vmul.f32 %v2195_v34, %v365_v48  ;;  %v2244_v55 = vmul.f32 %v2205_v36, %v365_v48  ;;  %v2247_v56 = vmul.f32 %v2210_v37, %v365_v48 }
 0x10e   : > { %v431_v57 = vmul.f32 %v2200_v35, %v365_v48  ;;  %v447_v58 = vpack.c.bf16 %v2233_v50, %v2213_v40  ;;  %v685_v59 = vpack.c.bf16 %v671_v51, %v2216_v41  ;;  %v2265_v3 = vmul.f32 %v1779_v47, %v2205_v36 }
 0x10f   : > { %3736 = vst [vmem:[#allocation12_spill] sm:$0xff] %v2247_v56  ;;  %v684_v61 = vpack.c.bf16 %v669_v53, %v668_v43  ;;  %v2270_v5 = vmul.f32 %v1778_v38, %v2210_v37  ;;  %v2273_v6 = vmul.f32 %v1779_v47, %v2210_v37 }
 0x110   : > { %v446_v1 = vpack.c.bf16 %v431_v57, %v430_v49 }
 0x111   : > { %725 = vmatmul.mubr.bf16.vlgmr.msra.gmra.mrb[16].mxu0 %v684_v61  ;;  %v2267_v4 = vpop.f32.mrb[4].mxu0  ;;  %3737 = vst [vmem:[#allocation13_spill] sm:$0xff] %v2270_v5  ;;  %3738 = vst [vmem:[#allocation14_spill] sm:$0xff] %v2273_v6 }
 0x112   : > { %583 = vmatmul.mubr.bf16.vlgmr.msra.gmra.mrb[0].mxu1 %v446_v1  ;;  %v378_v10 = vpop.f32.mrb[5].mxu0  ;;  %734 = vmatprep.mubr.bf16.mxu0 %v3625_v32  ;;  %v2278_v13 = vmul.f32 %v2267_v4, %v2200_v35  ;;  %v2282_v18 = vmul.f32 %v2267_v4, %v2190_v33 }
 0x113   : > { %931 = vmatpush1.bf16.msra.mxu1 %v2066_v8  ;;  %v2288_v24 = vmul.f32 %v2210_v37, %v378_v10  ;;  %v2290_v25 = vpop.f32.mrb[6].mxu0  ;;  %592 = vmatprep.mubr.bf16.mxu1 %v3625_v32  ;;  %v2294_v26 = vmul.f32 %v2200_v35, %v378_v10  ;;  %v2297_v27 = vmul.f32 %v2190_v33, %v378_v10 }
 0x114   : > { %932 = vmatprep.subr.bf16.mxu1 %v2072_v9  ;;  %v381_v28 = vpop.f32.mrb[7].mxu0  ;;  %v2302_v38 = vmul.f32 %v2290_v25, %v2200_v35  ;;  %v2306_v39 = vmul.f32 %v2290_v25, %v2190_v33  ;;  %1169 = vmatpush1.bf16.msra.mxu0 %v2066_v8  ;;  %v2310_v40 = vmul.f32 %v2195_v34, %v378_v10 }
 0x115   : > { %3739 = vst [vmem:[#allocation15_spill] sm:$0xff] %v2288_v24  ;;  %v2313_v41 = vmul.f32 %v2210_v37, %v381_v28  ;;  %v2316_v43 = vmul.f32 %v2200_v35, %v381_v28  ;;  %v673_v47 = vmul.f32 %v2190_v33, %v381_v28  ;;  %1170 = vmatprep.subr.bf16.mxu0 %v2072_v9 }
 0x116   : > { %3740 = vst [vmem:[#allocation16_spill] sm:$0xff] %v2310_v40  ;;  %v2321_v48 = vmul.f32 %v2195_v34, %v381_v28  ;;  %v2328_v51 = vmul.f32 %v2205_v36, %v378_v10  ;;  %v2331_v53 = vmul.f32 %v2205_v36, %v381_v28  ;;  %v2347_v28 = vmul.f32 %v2267_v4, %v2195_v34 }
 0x117   : > { %3741 = vst [vmem:[#allocation17_spill] sm:$0xff] %v2313_v41  ;;  %933 = vmatpush1.bf16.msra.mxu1 %v2081_v11  ;;  %v448_v61 = vpack.c.bf16 %v2316_v43, %v2294_v26  ;;  %v686_v1 = vpack.c.bf16 %v673_v47, %v2297_v27  ;;  %v2351_v57 = vmul.f32 %v2290_v25, %v2195_v34 }
 0x118   : > { %3742 = vst [vmem:[#allocation18_spill] sm:$0xff] %v2321_v48  ;;  %3743 = vst [vmem:[#allocation19_spill] sm:$0xff] %v2328_v51  ;;  %934 = vmatprep.subr.bf16.mxu1 %v2087_v12  ;;  %1171 = vmatpush1.bf16.msra.mxu0 %v2081_v11  ;;  %v2358_v27 = vmul.f32 %v2267_v4, %v2205_v36  ;;  %v2362_v43 = vmul.f32 %v2290_v25, %v2205_v36 }
 0x119   : > { %3744 = vst [vmem:[#allocation20_spill] sm:$0xff] %v2331_v53  ;;  %3745 = vst [vmem:[#allocation21_spill] sm:$0xff] %v2347_v28  ;;  %735 = vmatmul.mubr.bf16.gmra.mrb[20].mxu0 %v685_v59  ;;  %v2353_v26 = vpop.f32.mrb[8].mxu0  ;;  %1172 = vmatprep.subr.bf16.mxu0 %v2087_v12 }
 0x11a   : > { %3746 = vst [vmem:[#allocation22_spill] sm:$0xff] %v2351_v57  ;;  %3747 = vst [vmem:[#allocation23_spill] sm:$0xff] %v2358_v27  ;;  %593 = vmatmul.mubr.bf16.gmra.mrb[4].mxu1 %v447_v58  ;;  %744 = vmatprep.mubr.bf16.mxu0 %v3625_v32  ;;  %v2367_v0 = vpop.f32.mrb[9].mxu0  ;;  %v2371_v59 = vmul.f32 %v2353_v26, %v2200_v35  ;;  %v2375_v10 = vmul.f32 %v2353_v26, %v2190_v33 }
 0x11b   : > { %3748 = vst [vmem:[#allocation24_spill] sm:$0xff] %v2362_v43  ;;  %602 = vmatprep.mubr.bf16.mxu1 %v3625_v32  ;;  %935 = vmatpush1.bf16.msra.mxu1 %v2096_v14  ;;  %v2381_v58 = vpop.f32.mrb[10].mxu0  ;;  %v2385_v47 = vmul.f32 %v2200_v35, %v2367_v0  ;;  %v2389_v19 = vmul.f32 %v2190_v33, %v2367_v0 }
 0x11c   : > { %936 = vmatprep.subr.bf16.mxu1 %v2102_v15  ;;  %v2394_v60 = vpop.f32.mrb[11].mxu0  ;;  %v2398_v63 = vmul.f32 %v2381_v58, %v2200_v35  ;;  %v2402_v49 = vmul.f32 %v2381_v58, %v2190_v33  ;;  %1173 = vmatpush1.bf16.msra.mxu0 %v2096_v14  ;;  %v2407_v50 = vmul.f32 %v2195_v34, %v2367_v0 }
 0x11d   : > { %v2411_v62 = vmul.f32 %v2200_v35, %v2394_v60  ;;  %v2415_v32 = vmul.f32 %v2190_v33, %v2394_v60  ;;  %1174 = vmatprep.subr.bf16.mxu0 %v2102_v15  ;;  %v2420_v5 = vmul.f32 %v2195_v34, %v2394_v60  ;;  %v2424_v6 = vmul.f32 %v2205_v36, %v2367_v0 }
 0x11e   : > { %3749 = vst [vmem:[#allocation25_spill] sm:$0xff] %v2407_v50  ;;  %v2432_v46 = vmul.f32 %v2205_v36, %v2394_v60  ;;  %v2436_v56 = vmul.f32 %v2353_v26, %v2195_v34  ;;  %v2447_v41 = vmul.f32 %v2381_v58, %v2195_v34  ;;  %v2455_v28 = vmul.f32 %v2353_v26, %v2205_v36 }
 0x11f   : > { %3750 = vst [vmem:[#allocation26_spill] sm:$0xff] %v2420_v5  ;;  %3751 = vst [vmem:[#allocation27_spill] sm:$0xff] %v2424_v6  ;;  %937 = vmatpush1.bf16.msra.mxu1 %v2108_v16  ;;  %v2459_v57 = vmul.f32 %v2381_v58, %v2205_v36  ;;  %v2466_v5 = vmul.f32 %v2267_v4, %v2210_v37  ;;  %v2470_v27 = vmul.f32 %v2290_v25, %v2210_v37  ;;  %v3757_v6 = vmov 0  }
 0x120   : > { %3752 = vst [vmem:[#allocation28_spill] sm:$0xff] %v2432_v46  ;;  %3753 = vst [vmem:[#allocation29_spill] sm:$0xff] %v2436_v56  ;;  %938 = vmatprep.subr.bf16.mxu1 %v2114_v17  ;;  %1175 = vmatpush1.bf16.msra.mxu0 %v2108_v16 }
 0x121   : > { %3754 = vst [vmem:[#allocation30_spill] sm:$0xff] %v2447_v41  ;;  %3755 = vst [vmem:[#allocation31_spill] sm:$0xff] %v2455_v28  ;;  %745 = vmatmul.mubr.bf16.gmra.mrb[24].mxu0 %v686_v1  ;;  %v1790_v24 = vpop.f32.mrb[12].mxu0  ;;  %1176 = vmatprep.subr.bf16.mxu0 %v2114_v17 }
 0x122   : > { %3756 = vst [vmem:[#allocation32_spill] sm:$0xff] %v2459_v57  ;;  %603 = vmatmul.mubr.bf16.gmra.mrb[8].mxu1 %v448_v61  ;;  %754 = vmatprep.mubr.bf16.mxu0 %v3757_v6  ;;  %v410_v46 = vpop.f32.mrb[13].mxu0  ;;  %v2474_v1 = vmul.f32 %v1790_v24, %v2200_v35  ;;  %v2477_v43 = vmul.f32 %v1790_v24, %v2190_v33 }
 0x123   : > { %612 = vmatprep.mubr.bf16.mxu1 %v3757_v6  ;;  %939 = vmatpush1.bf16.msra.mxu1 %v2124_v20  ;;  %v1791_v4 = vpop.f32.mrb[14].mxu0  ;;  %v2484_v25 = vmul.f32 %v2200_v35, %v410_v46  ;;  %v680_v61 = vmul.f32 %v2190_v33, %v410_v46  ;;  %v2488_v56 = vmul.f32 %v2195_v34, %v410_v46 }
 0x124   : > { %940 = vmatprep.subr.bf16.mxu1 %v2129_v21  ;;  %v413_v41 = vpop.f32.mrb[15].mxu0  ;;  %1177 = vmatpush1.bf16.msra.mxu0 %v2124_v20  ;;  %v445_v50 = vmul.f32 %v1791_v4, %v2200_v35  ;;  %v683_v28 = vmul.f32 %v1791_v4, %v2190_v33  ;;  %v2495_v57 = vmul.f32 %v2205_v36, %v410_v46 }
 0x125   : > { %v443_v40 = vmul.f32 %v2200_v35, %v413_v41  ;;  %v681_v48 = vmul.f32 %v2190_v33, %v413_v41  ;;  %1178 = vmatprep.subr.bf16.mxu0 %v2129_v21  ;;  %v2501_v51 = vmul.f32 %v2195_v34, %v413_v41  ;;  %v2504_v53 = vmul.f32 %v2205_v36, %v413_v41 }
 0x126   : > { %v453_v20 = vpack.c.bf16 %v445_v50, %v2474_v1  ;;  %v691_v17 = vpack.c.bf16 %v683_v28, %v2477_v43  ;;  %v2509_v16 = vmul.f32 %v1790_v24, %v2195_v34  ;;  %v2512_v15 = vmul.f32 %v1791_v4, %v2195_v34 }
 0x127   : > { %941 = vmatpush1.bf16.msra.mxu1 %v2137_v22  ;;  %v452_v33 = vpack.c.bf16 %v443_v40, %v2484_v25  ;;  %v690_v35 = vpack.c.bf16 %v681_v48, %v680_v61  ;;  %v928_v21 = vpack.c.bf16 %v2501_v51, %v2488_v56  ;;  %v1166_v14 = vpack.c.bf16 %v2504_v53, %v2495_v57  ;;  %v3802_v51 = vld [vmem:[#allocation15_spill] sm:$0xff]  ;;  %v3804_v57 = vld [vmem:[#allocation14_spill] sm:$0xff] }
 0x128   : > { %942 = vmatprep.subr.bf16.mxu1 %v2143_v23  ;;  %1179 = vmatpush1.bf16.msra.mxu0 %v2137_v22  ;;  %v929_v50 = vpack.c.bf16 %v2512_v15, %v2509_v16  ;;  %v2525_v34 = vmul.f32 %v1790_v24, %v2205_v36  ;;  %v2528_v28 = vmul.f32 %v1791_v4, %v2205_v36 }
 0x129   : > { %v3758_v40 = vpack.c.bf16 %v2306_v39, %v2282_v18  ;;  %1180 = vmatprep.subr.bf16.mxu0 %v2143_v23  ;;  %v1401_v48 = vpack.c.bf16 %v2470_v27, %v2466_v5  ;;  %v2538_v43 = vmul.f32 %v2210_v37, %v2367_v0  ;;  %v2542_v1 = vmul.f32 %v2210_v37, %v2394_v60 }
 0x12a   : > { %v3759_v36 = vpack.c.bf16 %v2302_v38, %v2278_v13  ;;  %v1167_v18 = vpack.c.bf16 %v2528_v28, %v2525_v34  ;;  %v2552_v39 = vmul.f32 %v2353_v26, %v2210_v37  ;;  %v2556_v0 = vmul.f32 %v2381_v58, %v2210_v37  ;;  %v3805_v34 = vld [vmem:[#allocation13_spill] sm:$0xff] }
 0x12b   : > { %755 = vmatmul.mubr.bf16.gmra.mrb[28].mxu0 %v3758_v40  ;;  %943 = vmatpush1.bf16.msra.mxu1 %v2165_v29  ;;  %v1402_v60 = vpack.c.bf16 %v2542_v1, %v2538_v43  ;;  %v2563_v13 = vmul.f32 %v2210_v37, %v410_v46  ;;  %v2566_v38 = vmul.f32 %v2210_v37, %v413_v41 }
 0x12c   : > { %613 = vmatmul.mubr.bf16.gmra.mrb[12].mxu1 %v3759_v36  ;;  %764 = vmatprep.mubr.bf16.mxu0 %v3757_v6  ;;  %v1403_v26 = vpack.c.bf16 %v2556_v0, %v2552_v39  ;;  %v2573_v58 = vmul.f32 %v1790_v24, %v2210_v37  ;;  %v2576_v25 = vmul.f32 %v1791_v4, %v2210_v37  ;;  %v3792_v36 = vld [vmem:[#allocation32_spill] sm:$0xff] }
 0x12d   : > { %622 = vmatprep.mubr.bf16.mxu1 %v3757_v6  ;;  %944 = vmatprep.subr.bf16.mxu1 %v2172_v30  ;;  %v1404_v46 = vpack.c.bf16 %v2566_v38, %v2563_v13  ;;  %v3760_v24 = vpack.c.bf16 %v2415_v32, %v2389_v19  ;;  %v3761_v37 = vpack.c.bf16 %v2411_v62, %v2385_v47  ;;  %v3778_v62 = vld [vmem:[#allocation9_spill] sm:$0xff] }
 0x12e   : > { %1181 = vmatpush1.bf16.msra.mxu0 %v2165_v29  ;;  %v1405_v41 = vpack.c.bf16 %v2576_v25, %v2573_v58  ;;  %v3762_v4 = vpack.c.bf16 %v2402_v49, %v2375_v10  ;;  %v3763_v61 = vpack.c.bf16 %v2398_v63, %v2371_v59  ;;  %v3765_v32 = vpack.c.bf16 %v2241_v54, %v2223_v44  ;;  %v3771_v44 = vld [vmem:[#allocation8_spill] sm:$0xff]  ;;  %v3779_v63 = vld [vmem:[#allocation10_spill] sm:$0xff]  ;;  %v3784_v10 = vld [vmem:[#allocation21_spill] sm:$0xff] }
 0x12f   : > { %1182 = vmatprep.subr.bf16.mxu0 %v2172_v30  ;;  %945 = vmatpush1.bf16.msra.mxu1 %v2177_v31  ;;  %v3776_v54 = vld [vmem:[#allocation16_spill] sm:$0xff]  ;;  %v3783_v49 = vld [vmem:[#allocation22_spill] sm:$0xff]  ;;  %v3806_v15 = vpack.c.bf16 %v3804_v57, %v3805_v34 }
 0x130   : > { %1792 = vmatprep.subr.bf16.mxu1 %v2061_v7  ;;  %v3785_v47 = vpack.c.bf16 %v3783_v49, %v3784_v10 }
 0x132   : > { %1183 = vmatpush1.bf16.msra.mxu0 %v2177_v31 }
 0x133   : > { %765 = vmatmul.mubr.bf16.gmra.mrb[32].mxu0 %v3760_v24  ;;  %1406 = vmatprep.subr.bf16.mxu0 %v2061_v7  ;;  %v3764_v7 = vpack.c.bf16 %v2244_v55, %v2226_v45 }
 0x134   : > { %623 = vmatmul.mubr.bf16.gmra.mrb[16].mxu1 %v3761_v37  ;;  %774 = vmatprep.mubr.bf16.mxu0 %v3757_v6  ;;  %v3796_v37 = vld [vmem:[#allocation29_spill] sm:$0xff] }
 0x135   : > { %632 = vmatprep.mubr.bf16.mxu1 %v3757_v6 }
 0x13b   : > { %775 = vmatmul.mubr.bf16.gmra.mrb[36].mxu0 %v3762_v4 }
 0x13c   : > { %633 = vmatmul.mubr.bf16.gmra.mrb[20].mxu1 %v3763_v61  ;;  %784 = vmatprep.mubr.bf16.mxu0 %v3757_v6 }
 0x13d   : > { %642 = vmatprep.mubr.bf16.mxu1 %v3757_v6 }
 0x143   : > { %785 = vmatmul.mubr.bf16.gmra.mrb[40].mxu0 %v690_v35  ;;  %v3790_v35 = vld [vmem:[#allocation25_spill] sm:$0xff] }
 0x144   : > { %643 = vmatmul.mubr.bf16.gmra.mrb[24].mxu1 %v452_v33  ;;  %794 = vmatprep.mubr.bf16.mxu0 %v3757_v6  ;;  %v3789_v33 = vld [vmem:[#allocation26_spill] sm:$0xff] }
 0x145   : > { %652 = vmatprep.mubr.bf16.mxu1 %v3757_v6  ;;  %v3791_v40 = vpack.c.bf16 %v3789_v33, %v3790_v35 }
 0x14b   : > { %795 = vmatmul.mubr.bf16.gmra.mrb[44].mxu0 %v691_v17  ;;  %v3766_v17 = vpack.c.bf16 %v2265_v3, %v2262_v2  ;;  %v3780_v2 = vld [vmem:[#allocation24_spill] sm:$0xff]  ;;  %v3781_v3 = vld [vmem:[#allocation23_spill] sm:$0xff] }
 0x14c   : > { %653 = vmatmul.mubr.bf16.gmra.mrb[28].mxu1 %v453_v20  ;;  %1200 = vmatprep.mubr.bf16.mxu0 %v3757_v6  ;;  %v3767_v20 = vpack.c.bf16 %v2237_v52, %v2219_v42  ;;  %v3773_v42 = vld [vmem:[#allocation19_spill] sm:$0xff]  ;;  %v3775_v52 = vld [vmem:[#allocation18_spill] sm:$0xff]  ;;  %v3782_v19 = vpack.c.bf16 %v3780_v2, %v3781_v3 }
 0x14d   : > { %962 = vmatprep.mubr.bf16.mxu1 %v3757_v6  ;;  %v3777_v55 = vpack.c.bf16 %v3775_v52, %v3776_v54 }
 0x153   : > { %1201 = vmatmul.mubr.bf16.vlgmr.msra.gmra.mrb[48].mxu0 %v3764_v7 }
 0x154   : > { %963 = vmatmul.mubr.bf16.vlgmr.msra.gmra.mrb[32].mxu1 %v3765_v32  ;;  %1210 = vmatprep.mubr.bf16.mxu0 %v3757_v6 }
 0x155   : > { %1800 = vmatpush1.bf16.msra.mxu1 %v2066_v8  ;;  %972 = vmatprep.mubr.bf16.mxu1 %v3757_v6 }
 0x156   : > { %1793 = vmatprep.subr.bf16.mxu1 %v2072_v9  ;;  %1407 = vmatpush1.bf16.msra.mxu0 %v2066_v8  ;;  %v3768_v8 = vld [vmem:[#allocation5_spill] sm:$0xff] }
 0x157   : > { %1408 = vmatprep.subr.bf16.mxu0 %v2072_v9  ;;  %v3769_v9 = vld [vmem:[#allocation6_spill] sm:$0xff] }
 0x159   : > { %1801 = vmatpush1.bf16.msra.mxu1 %v2081_v11 }
 0x15a   : > { %1794 = vmatprep.subr.bf16.mxu1 %v2087_v12  ;;  %1409 = vmatpush1.bf16.msra.mxu0 %v2081_v11  ;;  %v3770_v11 = vld [vmem:[#allocation7_spill] sm:$0xff] }
 0x15b   : > { %1211 = vmatmul.mubr.bf16.gmra.mrb[52].mxu0 %v3766_v17  ;;  %1410 = vmatprep.subr.bf16.mxu0 %v2087_v12  ;;  %v3772_v12 = vld [vmem:[#allocation20_spill] sm:$0xff] }
 0x15c   : > { %973 = vmatmul.mubr.bf16.gmra.mrb[36].mxu1 %v3767_v20  ;;  %1220 = vmatprep.mubr.bf16.mxu0 %v3757_v6  ;;  %v3774_v45 = vpack.c.bf16 %v3772_v12, %v3773_v42 }
 0x15d   : > { %982 = vmatprep.mubr.bf16.mxu1 %v3757_v6  ;;  %1802 = vmatpush1.bf16.msra.mxu1 %v3768_v8 }
 0x15e   : > { %1795 = vmatprep.subr.bf16.mxu1 %v3769_v9  ;;  %1411 = vmatpush1.bf16.msra.mxu0 %v3768_v8 }
 0x15f   : > { %1412 = vmatprep.subr.bf16.mxu0 %v3769_v9 }
 0x161   : > { %1803 = vmatpush1.bf16.msra.mxu1 %v3770_v11 }
 0x162   : > { %1796 = vmatprep.subr.bf16.mxu1 %v3771_v44  ;;  %1413 = vmatpush1.bf16.msra.mxu0 %v3770_v11 }
 0x163   : > { %1221 = vmatmul.mubr.bf16.gmra.mrb[56].mxu0 %v3774_v45  ;;  %1414 = vmatprep.subr.bf16.mxu0 %v3771_v44 }
 0x164   : > { %983 = vmatmul.mubr.bf16.gmra.mrb[40].mxu1 %v3777_v55  ;;  %1230 = vmatprep.mubr.bf16.mxu0 %v3757_v6 }
 0x165   : > { %992 = vmatprep.mubr.bf16.mxu1 %v3757_v6  ;;  %1804 = vmatpush1.bf16.msra.mxu1 %v3778_v62 }
 0x166   : > { %1797 = vmatprep.subr.bf16.mxu1 %v3779_v63  ;;  %1415 = vmatpush1.bf16.msra.mxu0 %v3778_v62 }
 0x167   : > { %1416 = vmatprep.subr.bf16.mxu0 %v3779_v63 }
 0x169   : > { %1805 = vmatpush1.bf16.msra.mxu1 %v2137_v22 }
 0x16a   : > { %1798 = vmatprep.subr.bf16.mxu1 %v2143_v23  ;;  %1417 = vmatpush1.bf16.msra.mxu0 %v2137_v22  ;;  %v3786_v22 = vld [vmem:[#allocation28_spill] sm:$0xff] }
 0x16b   : > { %1231 = vmatmul.mubr.bf16.gmra.mrb[60].mxu0 %v3782_v19  ;;  %1418 = vmatprep.subr.bf16.mxu0 %v2143_v23  ;;  %v3787_v23 = vld [vmem:[#allocation27_spill] sm:$0xff] }
 0x16c   : > { %993 = vmatmul.mubr.bf16.gmra.mrb[44].mxu1 %v3785_v47  ;;  %1240 = vmatprep.mubr.bf16.mxu0 %v3757_v6  ;;  %v3788_v59 = vpack.c.bf16 %v3786_v22, %v3787_v23 }
 0x16d   : > { %1002 = vmatprep.mubr.bf16.mxu1 %v3757_v6  ;;  %1806 = vmatpush1.bf16.msra.mxu1 %v2165_v29 }
 0x16e   : > { %1799 = vmatprep.subr.bf16.mxu1 %v2172_v30  ;;  %1419 = vmatpush1.bf16.msra.mxu0 %v2165_v29  ;;  %v3793_v29 = vld [vmem:[#allocation31_spill] sm:$0xff] }
 0x16f   : > { %1420 = vmatprep.subr.bf16.mxu0 %v2172_v30  ;;  %v3794_v24 = vpack.c.bf16 %v3792_v36, %v3793_v29  ;;  %v3795_v30 = vld [vmem:[#allocation30_spill] sm:$0xff] }
 0x170   : > { %v3797_v4 = vpack.c.bf16 %v3795_v30, %v3796_v37 }
 0x171   : > { %1807 = vmatpush1.bf16.msra.mxu1 %v2177_v31 }
 0x172   : > { %1421 = vmatpush1.bf16.msra.mxu0 %v2177_v31  ;;  %v3799_v31 = vld [vmem:[#allocation11_spill] sm:$0xff] }
 0x173   : > { %1241 = vmatmul.mubr.bf16.gmra.mrb[64].mxu0 %v3788_v59 }
 0x174   : > { %1003 = vmatmul.mubr.bf16.gmra.mrb[48].mxu1 %v3791_v40  ;;  %1250 = vmatprep.mubr.bf16.mxu0 %v3757_v6 }
 0x175   : > { %1012 = vmatprep.mubr.bf16.mxu1 %v3757_v6 }
 0x17b   : > { %1251 = vmatmul.mubr.bf16.gmra.mrb[68].mxu0 %v3794_v24 }
 0x17c   : > { %1013 = vmatmul.mubr.bf16.gmra.mrb[52].mxu1 %v3797_v4  ;;  %1260 = vmatprep.mubr.bf16.mxu0 %v3757_v6 }
 0x17d   : > { %1022 = vmatprep.mubr.bf16.mxu1 %v3757_v6 }
 0x183   : > { %1261 = vmatmul.mubr.bf16.gmra.mrb[72].mxu0 %v1166_v14  ;;  %v3798_v14 = vld [vmem:[#allocation12_spill] sm:$0xff] }
 0x184   : > { %1023 = vmatmul.mubr.bf16.gmra.mrb[56].mxu1 %v928_v21  ;;  %1270 = vmatprep.mubr.bf16.mxu0 %v3757_v6  ;;  %v3800_v56 = vpack.c.bf16 %v3798_v14, %v3799_v31  ;;  %v3801_v21 = vld [vmem:[#allocation17_spill] sm:$0xff] }
 0x185   : > { %1032 = vmatprep.mubr.bf16.mxu1 %v3757_v6  ;;  %v3803_v53 = vpack.c.bf16 %v3801_v21, %v3802_v51 }
 0x18b   : > { %1271 = vmatmul.mubr.bf16.gmra.mrb[76].mxu0 %v1167_v18 }
 0x18c   : > { %1033 = vmatmul.mubr.bf16.gmra.mrb[60].mxu1 %v929_v50  ;;  %1438 = vmatprep.mubr.bf16.mxu0 %v3757_v6 }
 0x18d   : > { %1458 = vmatprep.mubr.bf16.mxu1 %v3757_v6 }
 0x193   : > { %1439 = vmatmul.mubr.bf16.vlgmr.msra.gmra.mrb[80].mxu0 %v3800_v56 }
 0x194   : > { %1459 = vmatmul.mubr.bf16.vlgmr.msra.gmra.mrb[64].mxu1 %v3803_v53  ;;  %1448 = vmatprep.mubr.bf16.mxu0 %v3757_v6 }
 0x195   : > { %1468 = vmatprep.mubr.bf16.mxu1 %v3757_v6 }
 0x19b   : > { %1449 = vmatmul.mubr.bf16.gmra.mrb[84].mxu0 %v3806_v15 }
 0x19c   : > { %1469 = vmatmul.mubr.bf16.gmra.mrb[68].mxu1 %v1401_v48 }
 0x19d   : > { %1478 = vmatprep.mubr.bf16.mxu1 %v3757_v6 }
 0x1a4   : > { %1479 = vmatmul.mubr.bf16.gmra.mrb[72].mxu1 %v1402_v60 }
 0x1a5   : > { %1488 = vmatprep.mubr.bf16.mxu1 %v3757_v6 }
 0x1ac   : > { %1489 = vmatmul.mubr.bf16.gmra.mrb[76].mxu1 %v1403_v26 }
 0x1ad   : > { %1498 = vmatprep.mubr.bf16.mxu1 %v3757_v6 }
 0x1b4   : > { %1499 = vmatmul.mubr.bf16.gmra.mrb[80].mxu1 %v1404_v46 }
 0x1b5   : > { %1508 = vmatprep.mubr.bf16.mxu1 %v3757_v6 }
 0x1bc   : > { %1509 = vmatmul.mubr.bf16.gmra.mrb[84].mxu1 %v1405_v41 }
 0x1e4   : > { %v2731_v16 = vpop.f32.mrb[16].mxu0 }
 0x1e5   : > { %v2733_v5 = vpop.f32.mrb[0].mxu1  ;;  %v2735_v27 = vpop.f32.mrb[17].mxu0 }
 0x1e6   : > { %vm805_vm0 = vcmp.gt.f32.partialorder %v2731_v16, %v2733_v5  ;;  %v2739_v50 = vpop.f32.mrb[1].mxu1  ;;  %v2741_v28 = vpop.f32.mrb[18].mxu0 }
 0x1e7   : > { %v2748_v6 = vsel %vm805_vm0, %v2731_v16, %v2733_v5  ;;  %vm806_vm1 = vcmp.gt.f32.partialorder %v2735_v27, %v2739_v50  ;;  %v2752_v48 = vpop.f32.mrb[2].mxu1  ;;  %v2754_v43 = vpop.f32.mrb[19].mxu0 }
 0x1e8   : > { %v2761_v1 = vsel %vm806_vm1, %v2735_v27, %v2739_v50  ;;  %vm807_vm2 = vcmp.gt.f32.partialorder %v2741_v28, %v2752_v48  ;;  %v2765_v18 = vpop.f32.mrb[3].mxu1 }
 0x1e9   : > { %v2772_v39 = vsel %vm807_vm2, %v2741_v28, %v2752_v48  ;;  %vm808_vm3 = vcmp.gt.f32.partialorder %v2754_v43, %v2765_v18 }
 0x1ea   : > { %v2781_v0 = vsel %vm808_vm3, %v2754_v43, %v2765_v18 }
 0x1ec   : > { %v2783_v60 = vpop.f32.mrb[20].mxu0 }
 0x1ed   : > { %v2785_v13 = vpop.f32.mrb[4].mxu1  ;;  %v2787_v38 = vpop.f32.mrb[21].mxu0 }
 0x1ee   : > { %vm809_vm4 = vcmp.gt.f32.partialorder %v2783_v60, %v2785_v13  ;;  %v2791_v26 = vpop.f32.mrb[5].mxu1  ;;  %v2793_v58 = vpop.f32.mrb[22].mxu0 }
 0x1ef   : > { %v2800_v25 = vsel %vm809_vm4, %v2783_v60, %v2785_v13  ;;  %vm810_vm5 = vcmp.gt.f32.partialorder %v2787_v38, %v2791_v26  ;;  %v2804_v46 = vpop.f32.mrb[6].mxu1  ;;  %v2806_v41 = vpop.f32.mrb[23].mxu0 }
 0x1f0   : > { %v2813_v61 = vsel %vm810_vm5, %v2787_v38, %v2791_v26  ;;  %vm811_vm6 = vcmp.gt.f32.partialorder %v2793_v58, %v2804_v46  ;;  %v2817_v7 = vpop.f32.mrb[7].mxu1 }
 0x1f1   : > { %v2824_v32 = vsel %vm811_vm6, %v2793_v58, %v2804_v46  ;;  %vm812_vm7 = vcmp.gt.f32.partialorder %v2806_v41, %v2817_v7 }
 0x1f2   : > { %v2833_v17 = vsel %vm812_vm7, %v2806_v41, %v2817_v7 }
 0x1f4   : > { %v2835_v20 = vpop.f32.mrb[24].mxu0 }
 0x1f5   : > { %v2837_v8 = vpop.f32.mrb[8].mxu1  ;;  %v2839_v9 = vpop.f32.mrb[25].mxu0 }
 0x1f6   : > { %vm813_vm8 = vcmp.gt.f32.partialorder %v2835_v20, %v2837_v8  ;;  %v2843_v11 = vpop.f32.mrb[9].mxu1  ;;  %v2845_v44 = vpop.f32.mrb[26].mxu0 }
 0x1f7   : > { %v2852_v12 = vsel %vm813_vm8, %v2835_v20, %v2837_v8  ;;  %vm814_vm9 = vcmp.gt.f32.partialorder %v2839_v9, %v2843_v11  ;;  %v2856_v42 = vpop.f32.mrb[10].mxu1  ;;  %v2858_v45 = vpop.f32.mrb[27].mxu0 }
 0x1f8   : > { %v2865_v52 = vsel %vm814_vm9, %v2839_v9, %v2843_v11  ;;  %vm815_vm10 = vcmp.gt.f32.partialorder %v2845_v44, %v2856_v42  ;;  %v2869_v54 = vpop.f32.mrb[11].mxu1 }
 0x1f9   : > { %v2876_v55 = vsel %vm815_vm10, %v2845_v44, %v2856_v42  ;;  %vm816_vm11 = vcmp.gt.f32.partialorder %v2858_v45, %v2869_v54 }
 0x1fa   : > { %v2885_v62 = vsel %vm816_vm11, %v2858_v45, %v2869_v54 }
 0x1fe   : > { %v2887_v63 = vpop.f32.mrb[28].mxu0 }
 0x1ff   : > { %v2889_v2 = vpop.f32.mrb[12].mxu1  ;;  %v2891_v3 = vpop.f32.mrb[29].mxu0 }
 0x200   : > { %vm817_vm12 = vcmp.gt.f32.partialorder %v2887_v63, %v2889_v2  ;;  %v2895_v19 = vpop.f32.mrb[13].mxu1  ;;  %v2897_v49 = vpop.f32.mrb[30].mxu0 }
 0x201   : > { %v2904_v10 = vsel %vm817_vm12, %v2887_v63, %v2889_v2  ;;  %vm3663_vm13 = vcmp.gt.f32.partialorder %v2891_v3, %v2895_v19  ;;  %v2908_v47 = vpop.f32.mrb[14].mxu1  ;;  %v2910_v22 = vpop.f32.mrb[31].mxu0 }
 0x202   : > { %v2917_v23 = vsel %vm3663_vm13, %v2891_v3, %v2895_v19  ;;  %vm3661_vm14 = vcmp.gt.f32.partialorder %v2897_v49, %v2908_v47  ;;  %v2921_v59 = vpop.f32.mrb[15].mxu1 }
 0x203   : > { %v2928_v33 = vsel %vm3661_vm14, %v2897_v49, %v2908_v47  ;;  %vm3662_vm15 = vcmp.gt.f32.partialorder %v2910_v22, %v2921_v59 }
 0x204   : > { %v2937_v35 = vsel %vm3662_vm15, %v2910_v22, %v2921_v59 }
 0x206   : > { %v2939_v40 = vpop.f32.mrb[32].mxu0 }
 0x207   : > { %v2941_v36 = vpop.f32.mrb[16].mxu1  ;;  %v2943_v29 = vpop.f32.mrb[33].mxu0 }
 0x208   : > { %vm3664_vm14 = vcmp.gt.f32.partialorder %v2939_v40, %v2941_v36  ;;  %v2947_v24 = vpop.f32.mrb[17].mxu1  ;;  %v2949_v30 = vpop.f32.mrb[34].mxu0 }
 0x209   : > { %3807 = vst [vmem:[#allocation5_spill] sm:$0xff] %v2947_v24  ;;  %3808 = vst [vmem:[#allocation6_spill] sm:$0xff] %v2949_v30  ;;  %v2956_v37 = vsel %vm3664_vm14, %v2939_v40, %v2941_v36  ;;  %vm3672_vm15 = vcmp.gt.f32.partialorder %v2943_v29, %v2947_v24  ;;  %v2960_v4 = vpop.f32.mrb[18].mxu1  ;;  %v2962_v14 = vpop.f32.mrb[35].mxu0 }
 0x20a   : > { %3809 = vst [vmem:[#allocation7_spill] sm:$0xff] %v2956_v37  ;;  %3810 = vst [vmem:[#allocation8_spill] sm:$0xff] %v2960_v4  ;;  %v2969_v31 = vsel %vm3672_vm15, %v2943_v29, %v2947_v24  ;;  %vm3665_vm13 = vcmp.gt.f32.partialorder %v2949_v30, %v2960_v4  ;;  %v2973_v56 = vpop.f32.mrb[19].mxu1 }
 0x20b   : > { %3811 = vst [vmem:[#allocation20_spill] sm:$0xff] %v2962_v14  ;;  %3812 = vst [vmem:[#allocation19_spill] sm:$0xff] %v2969_v31  ;;  %v2980_v21 = vsel %vm3665_vm13, %v2949_v30, %v2960_v4  ;;  %vm3668_vm14 = vcmp.gt.f32.partialorder %v2962_v14, %v2973_v56 }
 0x20c   : > { %3813 = vst [vmem:[#allocation18_spill] sm:$0xff] %v2973_v56  ;;  %3814 = vst [vmem:[#allocation16_spill] sm:$0xff] %v2980_v21  ;;  %v2989_v51 = vsel %vm3668_vm14, %v2962_v14, %v2973_v56 }
 0x20d   : > { %3815 = vst [vmem:[#allocation9_spill] sm:$0xff] %v2989_v51 }
 0x20e   : > { %v2991_v53 = vpop.f32.mrb[36].mxu0 }
 0x20f   : > { %3816 = vst [vmem:[#allocation10_spill] sm:$0xff] %v2991_v53  ;;  %v2993_v57 = vpop.f32.mrb[20].mxu1  ;;  %v2995_v34 = vpop.f32.mrb[37].mxu0 }
 0x210   : > { %3817 = vst [vmem:[#allocation24_spill] sm:$0xff] %v2993_v57  ;;  %3818 = vst [vmem:[#allocation23_spill] sm:$0xff] %v2995_v34  ;;  %vm3675_vm13 = vcmp.gt.f32.partialorder %v2991_v53, %v2993_v57  ;;  %v2999_v15 = vpop.f32.mrb[21].mxu1  ;;  %v3001_v21 = vpop.f32.mrb[38].mxu0 }
 0x211   : > { %3819 = vst [vmem:[#allocation22_spill] sm:$0xff] %v2999_v15  ;;  %3820 = vst [vmem:[#allocation21_spill] sm:$0xff] %v3001_v21  ;;  %v3008_v31 = vsel %vm3675_vm13, %v2991_v53, %v2993_v57  ;;  %vm3688_vm14 = vcmp.gt.f32.partialorder %v2995_v34, %v2999_v15  ;;  %v3012_v51 = vpop.f32.mrb[22].mxu1  ;;  %v3014_v56 = vpop.f32.mrb[39].mxu0 }
 0x212   : > { %3821 = vst [vmem:[#allocation28_spill] sm:$0xff] %v3008_v31  ;;  %3822 = vst [vmem:[#allocation27_spill] sm:$0xff] %v3012_v51  ;;  %v3021_v14 = vsel %vm3688_vm14, %v2995_v34, %v2999_v15  ;;  %vm3680_vm15 = vcmp.gt.f32.partialorder %v3001_v21, %v3012_v51  ;;  %v3025_v37 = vpop.f32.mrb[23].mxu1 }
 0x213   : > { %3823 = vst [vmem:[#allocation26_spill] sm:$0xff] %v3014_v56  ;;  %3824 = vst [vmem:[#allocation25_spill] sm:$0xff] %v3021_v14  ;;  %v3032_v31 = vsel %vm3680_vm15, %v3001_v21, %v3012_v51  ;;  %vm3684_vm13 = vcmp.gt.f32.partialorder %v3014_v56, %v3025_v37 }
 0x214   : > { %3825 = vst [vmem:[#allocation32_spill] sm:$0xff] %v3025_v37  ;;  %3826 = vst [vmem:[#allocation31_spill] sm:$0xff] %v3032_v31  ;;  %v3041_v14 = vsel %vm3684_vm13, %v3014_v56, %v3025_v37 }
 0x215   : > { %3827 = vst [vmem:[#allocation30_spill] sm:$0xff] %v3041_v14 }
 0x216   : > { %v3043_v15 = vpop.f32.mrb[40].mxu0 }
 0x217   : > { %3828 = vst [vmem:[#allocation29_spill] sm:$0xff] %v3043_v15  ;;  %v3045_v34 = vpop.f32.mrb[24].mxu1  ;;  %v3047_v57 = vpop.f32.mrb[41].mxu0 }
 0x218   : > { %3829 = vst [vmem:[#allocation12_spill] sm:$0xff] %v3045_v34  ;;  %3830 = vst [vmem:[#allocation11_spill] sm:$0xff] %v3047_v57  ;;  %vm3691_vm15 = vcmp.gt.f32.partialorder %v3043_v15, %v3045_v34  ;;  %v3051_v31 = vpop.f32.mrb[25].mxu1  ;;  %v3053_v51 = vpop.f32.mrb[42].mxu0 }
 0x219   : > { %3831 = vst [vmem:[#allocation17_spill] sm:$0xff] %v3051_v31  ;;  %3832 = vst [vmem:[#allocation15_spill] sm:$0xff] %v3053_v51  ;;  %v3060_v37 = vsel %vm3691_vm15, %v3043_v15, %v3045_v34  ;;  %vm3704_vm13 = vcmp.gt.f32.partialorder %v3047_v57, %v3051_v31  ;;  %v3064_v14 = vpop.f32.mrb[26].mxu1  ;;  %v3066_v56 = vpop.f32.mrb[43].mxu0 }
 0x21a   : > { %3833 = vst [vmem:[#allocation14_spill] sm:$0xff] %v3060_v37  ;;  %3834 = vst [vmem:[#allocation13_spill] sm:$0xff] %v3064_v14  ;;  %v3073_v21 = vsel %vm3704_vm13, %v3047_v57, %v3051_v31  ;;  %vm3696_vm14 = vcmp.gt.f32.partialorder %v3053_v51, %v3064_v14  ;;  %v3077_v53 = vpop.f32.mrb[27].mxu1 }
 0x21b   : > { %3835 = vst [vmem:[#allocation33_spill] sm:$0xff] %v3066_v56  ;;  %3836 = vst [vmem:[#allocation34_spill] sm:$0xff] %v3073_v21  ;;  %v3084_v37 = vsel %vm3696_vm14, %v3053_v51, %v3064_v14  ;;  %vm3700_vm15 = vcmp.gt.f32.partialorder %v3066_v56, %v3077_v53 }
 0x21c   : > { %3837 = vst [vmem:[#allocation35_spill] sm:$0xff] %v3077_v53  ;;  %3838 = vst [vmem:[#allocation36_spill] sm:$0xff] %v3084_v37  ;;  %v3093_v21 = vsel %vm3700_vm15, %v3066_v56, %v3077_v53 }
 0x21d   : > { %3839 = vst [vmem:[#allocation37_spill] sm:$0xff] %v3093_v21 }
 0x21e   : > { %v3095_v31 = vpop.f32.mrb[44].mxu0 }
 0x21f   : > { %3840 = vst [vmem:[#allocation38_spill] sm:$0xff] %v3095_v31  ;;  %v3097_v57 = vpop.f32.mrb[28].mxu1  ;;  %v3099_v34 = vpop.f32.mrb[45].mxu0 }
 0x220   : > { %3841 = vst [vmem:[#allocation39_spill] sm:$0xff] %v3097_v57  ;;  %3842 = vst [vmem:[#allocation40_spill] sm:$0xff] %v3099_v34  ;;  %vm3707_vm14 = vcmp.gt.f32.partialorder %v3095_v31, %v3097_v57  ;;  %v3103_v37 = vpop.f32.mrb[29].mxu1  ;;  %v3105_v14 = vpop.f32.mrb[46].mxu0 }
 0x221   : > { %3843 = vst [vmem:[#allocation41_spill] sm:$0xff] %v3103_v37  ;;  %3844 = vst [vmem:[#allocation42_spill] sm:$0xff] %v3105_v14  ;;  %v3112_v53 = vsel %vm3707_vm14, %v3095_v31, %v3097_v57  ;;  %vm3724_vm15 = vcmp.gt.f32.partialorder %v3099_v34, %v3103_v37  ;;  %v3116_v21 = vpop.f32.mrb[30].mxu1  ;;  %v3118_v56 = vpop.f32.mrb[47].mxu0  ;;  %v3725_v31 = vmov 1  }
 0x222   : > { %3845 = vst [vmem:[#allocation43_spill] sm:$0xff] %v3112_v53  ;;  %3846 = vst [vmem:[#allocation44_spill] sm:$0xff] %v3116_v21  ;;  %v3125_v51 = vsel %vm3724_vm15, %v3099_v34, %v3103_v37  ;;  %vm3721_vm13 = vcmp.gt.f32.partialorder %v3105_v14, %v3116_v21  ;;  %v3129_v15 = vpop.f32.mrb[31].mxu1  ;;  %v840_v16 = vsel %vm808_vm3, 2, %v3725_v31  ;;  %v844_v60 = vsel %vm812_vm7, 2, %v3725_v31 }
 0x223   : > { %3847 = vst [vmem:[#allocation45_spill] sm:$0xff] %v3118_v56  ;;  %3848 = vst [vmem:[#allocation46_spill] sm:$0xff] %v3125_v51  ;;  %v3136_v53 = vsel %vm3721_vm13, %v3105_v14, %v3116_v21  ;;  %vm3716_vm14 = vcmp.gt.f32.partialorder %v3118_v56, %v3129_v15  ;;  %v837_v21 = vsel %vm805_vm0, 2, %v3725_v31  ;;  %v848_v20 = vsel %vm816_vm11, 2, %v3725_v31 }
 0x224   : > { %3849 = vst [vmem:[#allocation47_spill] sm:$0xff] %v3129_v15  ;;  %3850 = vst [vmem:[#allocation48_spill] sm:$0xff] %v3136_v53  ;;  %v3145_v51 = vsel %vm3716_vm14, %v3118_v56, %v3129_v15  ;;  %v838_v53 = vsel %vm806_vm1, 2, %v3725_v31  ;;  %v839_v15 = vsel %vm807_vm2, 2, %v3725_v31 }
 0x225   : > { %3851 = vst [vmem:[#allocation49_spill] sm:$0xff] %v3145_v51 }
 0x226   : > { %v1202_v37 = vpop.f32.mrb[48].mxu0 }
 0x227   : > { %v964_v34 = vpop.f32.mrb[32].mxu1  ;;  %v1204_v57 = vpop.f32.mrb[49].mxu0 }
 0x228   : > { %vm1043_vm14 = vcmp.gt.f32.partialorder %v964_v34, %v2748_v6  ;;  %v966_v51 = vpop.f32.mrb[33].mxu1  ;;  %v1206_v56 = vpop.f32.mrb[50].mxu0 }
 0x229   : > { %v1075_v5 = vsel %vm1043_vm14, 3, %v837_v21  ;;  %v1107_v14 = vsel %vm1043_vm14, %v964_v34, %v2748_v6  ;;  %vm1044_vm0 = vcmp.gt.f32.partialorder %v966_v51, %v2761_v1  ;;  %v968_v27 = vpop.f32.mrb[34].mxu1  ;;  %v1208_v50 = vpop.f32.mrb[51].mxu0 }
 0x22a   : > { %vm1281_vm1 = vcmp.gt.f32.partialorder %v1202_v37, %v1107_v14  ;;  %v1076_v4 = vsel %vm1044_vm0, 3, %v838_v53  ;;  %v1108_v28 = vsel %vm1044_vm0, %v966_v51, %v2761_v1  ;;  %vm1045_vm2 = vcmp.gt.f32.partialorder %v968_v27, %v2772_v39  ;;  %v970_v48 = vpop.f32.mrb[35].mxu1 }
 0x22b   : > { %vm1282_vm13 = vcmp.gt.f32.partialorder %v1204_v57, %v1108_v28  ;;  %v1077_v30 = vsel %vm1045_vm2, 3, %v839_v15  ;;  %v1109_v24 = vsel %vm1045_vm2, %v968_v27, %v2772_v39  ;;  %vm1046_vm3 = vcmp.gt.f32.partialorder %v970_v48, %v2781_v0 }
 0x22c   : > { %vm1283_vm15 = vcmp.gt.f32.partialorder %v1206_v56, %v1109_v24  ;;  %v1078_v43 = vsel %vm1046_vm3, 3, %v840_v16  ;;  %v1110_v6 = vsel %vm1046_vm3, %v970_v48, %v2781_v0  ;;  %v3171_v18 = vsel %vm1281_vm1, 4, %v1075_v5 }
 0x22d   : > { %vm1284_vm14 = vcmp.gt.f32.partialorder %v1208_v50, %v1110_v6  ;;  %v3173_v21 = vsel %vm1281_vm1, %v1202_v37, %v1107_v14  ;;  %v3175_v53 = vsel %vm1282_vm13, 4, %v1076_v4  ;;  %v3177_v1 = vsel %vm1282_vm13, %v1204_v57, %v1108_v28 }
 0x22e   : > { %v1212_v51 = vpop.f32.mrb[52].mxu0  ;;  %v3179_v34 = vsel %vm1283_vm15, 4, %v1077_v30  ;;  %v3181_v15 = vsel %vm1283_vm15, %v1206_v56, %v1109_v24  ;;  %v3183_v39 = vsel %vm1284_vm14, 4, %v1078_v43  ;;  %v3185_v27 = vsel %vm1284_vm14, %v1208_v50, %v1110_v6 }
 0x22f   : > { %v974_v16 = vpop.f32.mrb[36].mxu1  ;;  %v1214_v0 = vpop.f32.mrb[53].mxu0  ;;  %v841_v37 = vsel %vm809_vm4, 2, %v3725_v31  ;;  %v842_v4 = vsel %vm810_vm5, 2, %v3725_v31  ;;  %v843_v24 = vsel %vm811_vm6, 2, %v3725_v31 }
 0x230   : > { %vm1047_vm13 = vcmp.gt.f32.partialorder %v974_v16, %v2800_v25  ;;  %v976_v30 = vpop.f32.mrb[37].mxu1  ;;  %v1216_v14 = vpop.f32.mrb[54].mxu0 }
 0x231   : > { %v1079_v13 = vsel %vm1047_vm13, 3, %v841_v37  ;;  %v1111_v56 = vsel %vm1047_vm13, %v974_v16, %v2800_v25  ;;  %vm1048_vm4 = vcmp.gt.f32.partialorder %v976_v30, %v2813_v61  ;;  %v978_v38 = vpop.f32.mrb[38].mxu1  ;;  %v1218_v26 = vpop.f32.mrb[55].mxu0 }
 0x232   : > { %vm1285_vm5 = vcmp.gt.f32.partialorder %v1212_v51, %v1111_v56  ;;  %v1080_v57 = vsel %vm1048_vm4, 3, %v842_v4  ;;  %v1112_v58 = vsel %vm1048_vm4, %v976_v30, %v2813_v61  ;;  %vm1049_vm6 = vcmp.gt.f32.partialorder %v978_v38, %v2824_v32  ;;  %v980_v46 = vpop.f32.mrb[39].mxu1 }
 0x233   : > { %vm1286_vm15 = vcmp.gt.f32.partialorder %v1214_v0, %v1112_v58  ;;  %v1081_v5 = vsel %vm1049_vm6, 3, %v843_v24  ;;  %v1113_v50 = vsel %vm1049_vm6, %v978_v38, %v2824_v32  ;;  %vm1050_vm7 = vcmp.gt.f32.partialorder %v980_v46, %v2833_v17 }
 0x234   : > { %vm1287_vm0 = vcmp.gt.f32.partialorder %v1216_v14, %v1113_v50  ;;  %v1082_v41 = vsel %vm1050_vm7, 3, %v844_v60  ;;  %v1114_v25 = vsel %vm1050_vm7, %v980_v46, %v2833_v17  ;;  %v3211_v7 = vsel %vm1285_vm5, 4, %v1079_v13 }
 0x235   : > { %vm1288_vm1 = vcmp.gt.f32.partialorder %v1218_v26, %v1114_v25  ;;  %v3213_v28 = vsel %vm1285_vm5, %v1212_v51, %v1111_v56  ;;  %v3215_v48 = vsel %vm1286_vm15, 4, %v1080_v57  ;;  %v3217_v61 = vsel %vm1286_vm15, %v1214_v0, %v1112_v58 }
 0x236   : > { %v1222_v43 = vpop.f32.mrb[56].mxu0  ;;  %v3219_v6 = vsel %vm1287_vm0, 4, %v1081_v5  ;;  %v3221_v16 = vsel %vm1287_vm0, %v1216_v14, %v1113_v50  ;;  %v3223_v32 = vsel %vm1288_vm1, 4, %v1082_v41  ;;  %v3225_v37 = vsel %vm1288_vm1, %v1218_v26, %v1114_v25 }
 0x237   : > { %v984_v4 = vpop.f32.mrb[40].mxu1  ;;  %v1224_v17 = vpop.f32.mrb[57].mxu0  ;;  %v845_v51 = vsel %vm813_vm8, 2, %v3725_v31  ;;  %v846_v0 = vsel %vm814_vm9, 2, %v3725_v31  ;;  %v847_v24 = vsel %vm815_vm10, 2, %v3725_v31  ;;  %v849_v25 = vsel %vm817_vm12, 2, %v3725_v31 }
 0x238   : > { %vm1051_vm2 = vcmp.gt.f32.partialorder %v984_v4, %v2852_v12  ;;  %v986_v30 = vpop.f32.mrb[41].mxu1  ;;  %v1226_v14 = vpop.f32.mrb[58].mxu0  ;;  %vm3852_vm4 = vcmp.gt.f32.partialorder %v2891_v3, %v2895_v19  ;;  %vm3853_vm5 = vcmp.gt.f32.partialorder %v2897_v49, %v2908_v47  ;;  %vm3854_vm15 = vcmp.gt.f32.partialorder %v2910_v22, %v2921_v59 }
 0x239   : > { %v1083_v8 = vsel %vm1051_vm2, 3, %v845_v51  ;;  %v1115_v60 = vsel %vm1051_vm2, %v984_v4, %v2852_v12  ;;  %vm1052_vm8 = vcmp.gt.f32.partialorder %v986_v30, %v2865_v52  ;;  %v988_v9 = vpop.f32.mrb[42].mxu1  ;;  %v1228_v11 = vpop.f32.mrb[59].mxu0  ;;  %v851_v4 = vsel %vm3853_vm5, 2, %v3725_v31 }
 0x23a   : > { %vm1289_vm9 = vcmp.gt.f32.partialorder %v1222_v43, %v1115_v60  ;;  %v1084_v13 = vsel %vm1052_vm8, 3, %v846_v0  ;;  %v1116_v44 = vsel %vm1052_vm8, %v986_v30, %v2865_v52  ;;  %vm1053_vm10 = vcmp.gt.f32.partialorder %v988_v9, %v2876_v55  ;;  %v990_v42 = vpop.f32.mrb[43].mxu1 }
 0x23b   : > { %vm1290_vm3 = vcmp.gt.f32.partialorder %v1224_v17, %v1116_v44  ;;  %v1085_v56 = vsel %vm1053_vm10, 3, %v847_v24  ;;  %v1117_v38 = vsel %vm1053_vm10, %v988_v9, %v2876_v55  ;;  %vm1054_vm11 = vcmp.gt.f32.partialorder %v990_v42, %v2885_v62 }
 0x23c   : > { %vm1291_vm14 = vcmp.gt.f32.partialorder %v1226_v14, %v1117_v38  ;;  %v1086_v45 = vsel %vm1054_vm11, 3, %v848_v20  ;;  %v1118_v12 = vsel %vm1054_vm11, %v990_v42, %v2885_v62  ;;  %v3251_v54 = vsel %vm1289_vm9, 4, %v1083_v8 }
 0x23d   : > { %vm1292_vm13 = vcmp.gt.f32.partialorder %v1228_v11, %v1118_v12  ;;  %v3253_v26 = vsel %vm1289_vm9, %v1222_v43, %v1115_v60  ;;  %v3255_v57 = vsel %vm1290_vm3, 4, %v1084_v13  ;;  %v3257_v52 = vsel %vm1290_vm3, %v1224_v17, %v1116_v44 }
 0x23e   : > { %v1232_v58 = vpop.f32.mrb[60].mxu0  ;;  %v3259_v46 = vsel %vm1291_vm14, 4, %v1085_v56  ;;  %v3261_v5 = vsel %vm1291_vm14, %v1226_v14, %v1117_v38  ;;  %v3263_v55 = vsel %vm1292_vm13, 4, %v1086_v45  ;;  %v3265_v50 = vsel %vm1292_vm13, %v1228_v11, %v1118_v12  ;;  %v3856_v56 = vld [vmem:[#allocation5_spill] sm:$0xff]  ;;  %v3858_v45 = vld [vmem:[#allocation6_spill] sm:$0xff]  ;;  %v3859_v12 = vld [vmem:[#allocation8_spill] sm:$0xff] }
 0x23f   : > { %v994_v41 = vpop.f32.mrb[44].mxu1  ;;  %v1234_v62 = vpop.f32.mrb[61].mxu0  ;;  %v850_v43 = vsel %vm3852_vm4, 2, %v3725_v31  ;;  %v852_v63 = vsel %vm3854_vm15, 2, %v3725_v31  ;;  %vm3855_vm10 = vcmp.gt.f32.partialorder %v2939_v40, %v2941_v36  ;;  %vm3857_vm3 = vcmp.gt.f32.partialorder %v2943_v29, %v3856_v56 }
 0x240   : > { %vm1055_vm6 = vcmp.gt.f32.partialorder %v994_v41, %v2904_v10  ;;  %v996_v17 = vpop.f32.mrb[45].mxu1  ;;  %v1236_v51 = vpop.f32.mrb[62].mxu0  ;;  %v853_v42 = vsel %vm3855_vm10, 2, %v3725_v31  ;;  %v854_v38 = vsel %vm3857_vm3, 2, %v3725_v31  ;;  %vm3860_vm11 = vcmp.gt.f32.partialorder %v3858_v45, %v3859_v12 }
 0x241   : > { %v1087_v2 = vsel %vm1055_vm6, 3, %v849_v25  ;;  %v1119_v0 = vsel %vm1055_vm6, %v994_v41, %v2904_v10  ;;  %vm1056_vm12 = vcmp.gt.f32.partialorder %v996_v17, %v2917_v23  ;;  %v998_v3 = vpop.f32.mrb[46].mxu1  ;;  %v1238_v19 = vpop.f32.mrb[63].mxu0  ;;  %v3861_v41 = vld [vmem:[#allocation7_spill] sm:$0xff] }
 0x242   : > { %vm1293_vm7 = vcmp.gt.f32.partialorder %v1232_v58, %v1119_v0  ;;  %v1088_v24 = vsel %vm1056_vm12, 3, %v850_v43  ;;  %v1120_v49 = vsel %vm1056_vm12, %v996_v17, %v2917_v23  ;;  %vm1057_vm0 = vcmp.gt.f32.partialorder %v998_v3, %v2928_v33  ;;  %v1000_v47 = vpop.f32.mrb[47].mxu1  ;;  %v3862_v43 = vld [vmem:[#allocation20_spill] sm:$0xff] }
 0x243   : > { %vm1294_vm1 = vcmp.gt.f32.partialorder %v1234_v62, %v1120_v49  ;;  %v1089_v30 = vsel %vm1057_vm0, 3, %v851_v4  ;;  %v1121_v14 = vsel %vm1057_vm0, %v998_v3, %v2928_v33  ;;  %vm1058_vm2 = vcmp.gt.f32.partialorder %v1000_v47, %v2937_v35  ;;  %v3863_v4 = vld [vmem:[#allocation18_spill] sm:$0xff]  ;;  %v3866_v3 = vld [vmem:[#allocation16_spill] sm:$0xff] }
 0x244   : > { %vm1295_vm8 = vcmp.gt.f32.partialorder %v1236_v51, %v1121_v14  ;;  %v1090_v22 = vsel %vm1058_vm2, 3, %v852_v63  ;;  %v1122_v10 = vsel %vm1058_vm2, %v1000_v47, %v2937_v35  ;;  %v3291_v59 = vsel %vm1293_vm7, 4, %v1087_v2  ;;  %v3867_v47 = vld [vmem:[#allocation9_spill] sm:$0xff] }
 0x245   : > { %vm1296_vm9 = vcmp.gt.f32.partialorder %v1238_v19, %v1122_v10  ;;  %v3293_v20 = vsel %vm1293_vm7, %v1232_v58, %v1119_v0  ;;  %v3295_v8 = vsel %vm1294_vm1, 4, %v1088_v24  ;;  %v3297_v23 = vsel %vm1294_vm1, %v1234_v62, %v1120_v49 }
 0x246   : > { %v1242_v60 = vpop.f32.mrb[64].mxu0  ;;  %v3299_v9 = vsel %vm1295_vm8, 4, %v1089_v30  ;;  %v3301_v11 = vsel %vm1295_vm8, %v1236_v51, %v1121_v14  ;;  %v3303_v33 = vsel %vm1296_vm9, 4, %v1090_v22  ;;  %v3305_v13 = vsel %vm1296_vm9, %v1238_v19, %v1122_v10  ;;  %v3865_v51 = vld [vmem:[#allocation19_spill] sm:$0xff] }
 0x247   : > { %v1004_v44 = vpop.f32.mrb[48].mxu1  ;;  %v1244_v35 = vpop.f32.mrb[65].mxu0  ;;  %v855_v58 = vsel %vm3860_vm11, 2, %v3725_v31  ;;  %vm3864_vm13 = vcmp.gt.f32.partialorder %v3862_v43, %v3863_v4  ;;  %v3868_v43 = vld [vmem:[#allocation10_spill] sm:$0xff]  ;;  %v3869_v4 = vld [vmem:[#allocation24_spill] sm:$0xff] }
 0x248   : > { %vm1059_vm14 = vcmp.gt.f32.partialorder %v1004_v44, %v3861_v41  ;;  %v1006_v62 = vpop.f32.mrb[49].mxu1  ;;  %v1246_v25 = vpop.f32.mrb[66].mxu0  ;;  %v856_v40 = vsel %vm3864_vm13, 2, %v3725_v31  ;;  %vm3870_vm1 = vcmp.gt.f32.partialorder %v3868_v43, %v3869_v4 }
 0x249   : > { %v1091_v36 = vsel %vm1059_vm14, 3, %v853_v42  ;;  %v1123_v17 = vsel %vm1059_vm14, %v1004_v44, %v3861_v41  ;;  %vm1060_vm4 = vcmp.gt.f32.partialorder %v1006_v62, %v3865_v51  ;;  %v1008_v29 = vpop.f32.mrb[50].mxu1  ;;  %v1248_v63 = vpop.f32.mrb[67].mxu0 }
 0x24a   : > { %vm1297_vm5 = vcmp.gt.f32.partialorder %v1242_v60, %v1123_v17  ;;  %v1092_v2 = vsel %vm1060_vm4, 3, %v854_v38  ;;  %v1124_v0 = vsel %vm1060_vm4, %v1006_v62, %v3865_v51  ;;  %vm1061_vm6 = vcmp.gt.f32.partialorder %v1008_v29, %v3866_v3  ;;  %v1010_v19 = vpop.f32.mrb[51].mxu1 }
 0x24b   : > { %vm1298_vm15 = vcmp.gt.f32.partialorder %v1244_v35, %v1124_v0  ;;  %v1093_v24 = vsel %vm1061_vm6, 3, %v855_v58  ;;  %v1125_v49 = vsel %vm1061_vm6, %v1008_v29, %v3866_v3  ;;  %vm1062_vm12 = vcmp.gt.f32.partialorder %v1010_v19, %v3867_v47  ;;  %v3877_v29 = vld [vmem:[#allocation28_spill] sm:$0xff] }
 0x24c   : > { %vm1299_vm7 = vcmp.gt.f32.partialorder %v1246_v25, %v1125_v49  ;;  %v1094_v30 = vsel %vm1062_vm12, 3, %v856_v40  ;;  %v1126_v14 = vsel %vm1062_vm12, %v1010_v19, %v3867_v47  ;;  %v3331_v22 = vsel %vm1297_vm5, 4, %v1091_v36  ;;  %v3871_v40 = vld [vmem:[#allocation23_spill] sm:$0xff]  ;;  %v3879_v3 = vld [vmem:[#allocation32_spill] sm:$0xff]  ;;  %v3881_v47 = vld [vmem:[#allocation25_spill] sm:$0xff] }
 0x24d   : > { %vm1300_vm0 = vcmp.gt.f32.partialorder %v1248_v63, %v1126_v14  ;;  %v3333_v10 = vsel %vm1297_vm5, %v1242_v60, %v1123_v17  ;;  %v3335_v44 = vsel %vm1298_vm15, 4, %v1092_v2  ;;  %v3337_v42 = vsel %vm1298_vm15, %v1244_v35, %v1124_v0  ;;  %v3872_v35 = vld [vmem:[#allocation22_spill] sm:$0xff]  ;;  %v3874_v17 = vld [vmem:[#allocation21_spill] sm:$0xff] }
 0x24e   : > { %v1252_v56 = vpop.f32.mrb[68].mxu0  ;;  %v3339_v38 = vsel %vm1299_vm7, 4, %v1093_v24  ;;  %v3341_v45 = vsel %vm1299_vm7, %v1246_v25, %v1125_v49  ;;  %v3343_v12 = vsel %vm1300_vm0, 4, %v1094_v30  ;;  %v3345_v58 = vsel %vm1300_vm0, %v1248_v63, %v1126_v14  ;;  %v3875_v25 = vld [vmem:[#allocation27_spill] sm:$0xff]  ;;  %v3878_v0 = vld [vmem:[#allocation26_spill] sm:$0xff] }
 0x24f   : > { %v1014_v41 = vpop.f32.mrb[52].mxu1  ;;  %v1254_v62 = vpop.f32.mrb[69].mxu0  ;;  %v857_v60 = vsel %vm3870_vm1, 2, %v3725_v31  ;;  %vm3873_vm2 = vcmp.gt.f32.partialorder %v3871_v40, %v3872_v35  ;;  %vm3876_vm8 = vcmp.gt.f32.partialorder %v3874_v17, %v3875_v25  ;;  %vm3880_vm10 = vcmp.gt.f32.partialorder %v3878_v0, %v3879_v3  ;;  %v3882_v40 = vld [vmem:[#allocation31_spill] sm:$0xff]  ;;  %v3883_v0 = vld [vmem:[#allocation30_spill] sm:$0xff] }
 0x250   : > { %v858_v36 = vsel %vm3873_vm2, 2, %v3725_v31  ;;  %v859_v51 = vsel %vm3876_vm8, 2, %v3725_v31  ;;  %vm1063_vm9 = vcmp.gt.f32.partialorder %v1014_v41, %v3877_v29  ;;  %v1016_v63 = vpop.f32.mrb[53].mxu1  ;;  %v1256_v2 = vpop.f32.mrb[70].mxu0  ;;  %v860_v19 = vsel %vm3880_vm10, 2, %v3725_v31 }
 0x251   : > { %v1095_v24 = vsel %vm1063_vm9, 3, %v857_v60  ;;  %v1127_v49 = vsel %vm1063_vm9, %v1014_v41, %v3877_v29  ;;  %vm1064_vm3 = vcmp.gt.f32.partialorder %v1016_v63, %v3881_v47  ;;  %v1018_v30 = vpop.f32.mrb[54].mxu1  ;;  %v1258_v14 = vpop.f32.mrb[71].mxu0 }
 0x252   : > { %vm1301_vm11 = vcmp.gt.f32.partialorder %v1252_v56, %v1127_v49  ;;  %v1096_v43 = vsel %vm1064_vm3, 3, %v858_v36  ;;  %v1128_v4 = vsel %vm1064_vm3, %v1016_v63, %v3881_v47  ;;  %vm1065_vm14 = vcmp.gt.f32.partialorder %v1018_v30, %v3882_v40  ;;  %v1020_v35 = vpop.f32.mrb[55].mxu1 }
 0x253   : > { %vm1302_vm13 = vcmp.gt.f32.partialorder %v1254_v62, %v1128_v4  ;;  %v1097_v17 = vsel %vm1065_vm14, 3, %v859_v51  ;;  %v1129_v25 = vsel %vm1065_vm14, %v1018_v30, %v3882_v40  ;;  %vm1066_vm4 = vcmp.gt.f32.partialorder %v1020_v35, %v3883_v0 }
 0x254   : > { %vm1303_vm5 = vcmp.gt.f32.partialorder %v1256_v2, %v1129_v25  ;;  %v1098_v60 = vsel %vm1066_vm4, 3, %v860_v19  ;;  %v1130_v41 = vsel %vm1066_vm4, %v1020_v35, %v3883_v0  ;;  %v3371_v29 = vsel %vm1301_vm11, 4, %v1095_v24  ;;  %v3893_v0 = vld [vmem:[#allocation29_spill] sm:$0xff] }
 0x255   : > { %3884 = vst [vmem:[#allocation5_spill] sm:$0xff] %v3371_v29  ;;  %vm1304_vm6 = vcmp.gt.f32.partialorder %v1258_v14, %v1130_v41  ;;  %v3373_v3 = vsel %vm1301_vm11, %v1252_v56, %v1127_v49  ;;  %v3375_v36 = vsel %vm1302_vm13, 4, %v1096_v43  ;;  %v3377_v63 = vsel %vm1302_vm13, %v1254_v62, %v1128_v4  ;;  %v3894_v29 = vld [vmem:[#allocation12_spill] sm:$0xff]  ;;  %v3896_v49 = vld [vmem:[#allocation11_spill] sm:$0xff]  ;;  %v3897_v62 = vld [vmem:[#allocation17_spill] sm:$0xff] }
 0x256   : > { %3885 = vst [vmem:[#allocation6_spill] sm:$0xff] %v3373_v3  ;;  %3886 = vst [vmem:[#allocation8_spill] sm:$0xff] %v3375_v36  ;;  %v1262_v47 = vpop.f32.mrb[72].mxu0  ;;  %v3379_v31 = vsel %vm1303_vm5, 4, %v1097_v17  ;;  %v3381_v51 = vsel %vm1303_vm5, %v1256_v2, %v1129_v25  ;;  %v3383_v30 = vsel %vm1304_vm6, 4, %v1098_v60  ;;  %v3385_v40 = vsel %vm1304_vm6, %v1258_v14, %v1130_v41  ;;  %v3899_v4 = vld [vmem:[#allocation15_spill] sm:$0xff] }
 0x257   : > { %3887 = vst [vmem:[#allocation7_spill] sm:$0xff] %v3377_v63  ;;  %3888 = vst [vmem:[#allocation20_spill] sm:$0xff] %v3379_v31  ;;  %v1024_v19 = vpop.f32.mrb[56].mxu1  ;;  %v1264_v35 = vpop.f32.mrb[73].mxu0  ;;  %v3892_v24 = vmov 1   ;;  %vm3895_vm15 = vcmp.gt.f32.partialorder %v3893_v0, %v3894_v29  ;;  %vm3898_vm12 = vcmp.gt.f32.partialorder %v3896_v49, %v3897_v62  ;;  %v3900_v2 = vld [vmem:[#allocation13_spill] sm:$0xff] }
 0x258   : > { %3889 = vst [vmem:[#allocation18_spill] sm:$0xff] %v3381_v51  ;;  %3890 = vst [vmem:[#allocation19_spill] sm:$0xff] %v3383_v30  ;;  %v861_v56 = vsel %vm3895_vm15, 2, %v3892_v24  ;;  %v862_v43 = vsel %vm3898_vm12, 2, %v3892_v24  ;;  %vm3901_vm7 = vcmp.gt.f32.partialorder %v3899_v4, %v3900_v2  ;;  %v3902_v25 = vld [vmem:[#allocation14_spill] sm:$0xff]  ;;  %v1026_v14 = vpop.f32.mrb[57].mxu1 }
 0x259   : > { %3891 = vst [vmem:[#allocation16_spill] sm:$0xff] %v3385_v40  ;;  %v863_v17 = vsel %vm3901_vm7, 2, %v3892_v24  ;;  %vm1067_vm0 = vcmp.gt.f32.partialorder %v1024_v19, %v3902_v25  ;;  %v1266_v60 = vpop.f32.mrb[74].mxu0  ;;  %v3903_v41 = vld [vmem:[#allocation33_spill] sm:$0xff]  ;;  %v3904_v30 = vld [vmem:[#allocation35_spill] sm:$0xff]  ;;  %v3906_v31 = vld [vmem:[#allocation34_spill] sm:$0xff] }
 0x25a   : > { %vm3905_vm1 = vcmp.gt.f32.partialorder %v3903_v41, %v3904_v30  ;;  %v1099_v0 = vsel %vm1067_vm0, 3, %v861_v56  ;;  %v1131_v40 = vsel %vm1067_vm0, %v1024_v19, %v3902_v25  ;;  %vm1068_vm2 = vcmp.gt.f32.partialorder %v1026_v14, %v3906_v31  ;;  %v1028_v49 = vpop.f32.mrb[58].mxu1  ;;  %v1268_v62 = vpop.f32.mrb[75].mxu0  ;;  %v3907_v2 = vld [vmem:[#allocation36_spill] sm:$0xff]  ;;  %v3908_v30 = vld [vmem:[#allocation37_spill] sm:$0xff] }
 0x25b   : > { %v864_v29 = vsel %vm3905_vm1, 2, %v3892_v24  ;;  %vm1305_vm8 = vcmp.gt.f32.partialorder %v1262_v47, %v1131_v40  ;;  %v1100_v51 = vsel %vm1068_vm2, 3, %v862_v43  ;;  %v1132_v4 = vsel %vm1068_vm2, %v1026_v14, %v3906_v31  ;;  %v1030_v36 = vpop.f32.mrb[59].mxu1 }
 0x25c   : > { %vm1069_vm9 = vcmp.gt.f32.partialorder %v1028_v49, %v3907_v2  ;;  %vm1306_vm10 = vcmp.gt.f32.partialorder %v1264_v35, %v1132_v4  ;;  %vm1070_vm3 = vcmp.gt.f32.partialorder %v1030_v36, %v3908_v30  ;;  %v3411_v25 = vsel %vm1305_vm8, 4, %v1099_v0 }
 0x25d   : > { %v1101_v63 = vsel %vm1069_vm9, 3, %v863_v17  ;;  %v1133_v3 = vsel %vm1069_vm9, %v1028_v49, %v3907_v2  ;;  %v1102_v56 = vsel %vm1070_vm3, 3, %v864_v29  ;;  %v1134_v19 = vsel %vm1070_vm3, %v1030_v36, %v3908_v30  ;;  %3909 = vst [vmem:[#allocation9_spill] sm:$0xff] %v3411_v25  ;;  %v3917_v30 = vld [vmem:[#allocation38_spill] sm:$0xff] }
 0x25e   : > { %vm1307_vm11 = vcmp.gt.f32.partialorder %v1266_v60, %v1133_v3  ;;  %vm1308_vm14 = vcmp.gt.f32.partialorder %v1268_v62, %v1134_v19  ;;  %v3413_v41 = vsel %vm1305_vm8, %v1262_v47, %v1131_v40  ;;  %v3415_v31 = vsel %vm1306_vm10, 4, %v1100_v51  ;;  %v1272_v14 = vpop.f32.mrb[76].mxu0  ;;  %v3918_v47 = vld [vmem:[#allocation39_spill] sm:$0xff]  ;;  %v3920_v51 = vld [vmem:[#allocation40_spill] sm:$0xff] }
 0x25f   : > { %3910 = vst [vmem:[#allocation10_spill] sm:$0xff] %v3413_v41  ;;  %3911 = vst [vmem:[#allocation24_spill] sm:$0xff] %v3415_v31  ;;  %v3417_v43 = vsel %vm1306_vm10, %v1264_v35, %v1132_v4  ;;  %v3419_v17 = vsel %vm1307_vm11, 4, %v1101_v63  ;;  %v3421_v49 = vsel %vm1307_vm11, %v1266_v60, %v1133_v3  ;;  %v3423_v2 = vsel %vm1308_vm14, 4, %v1102_v56  ;;  %v1034_v36 = vpop.f32.mrb[60].mxu1  ;;  %v1274_v0 = vpop.f32.mrb[77].mxu0 }
 0x260   : > { %3912 = vst [vmem:[#allocation23_spill] sm:$0xff] %v3417_v43  ;;  %3913 = vst [vmem:[#allocation22_spill] sm:$0xff] %v3419_v17  ;;  %v3425_v29 = vsel %vm1308_vm14, %v1268_v62, %v1134_v19  ;;  %vm3919_vm13 = vcmp.gt.f32.partialorder %v3917_v30, %v3918_v47  ;;  %v3921_v35 = vld [vmem:[#allocation41_spill] sm:$0xff]  ;;  %v3923_v63 = vld [vmem:[#allocation42_spill] sm:$0xff]  ;;  %v1036_v62 = vpop.f32.mrb[61].mxu1  ;;  %v1276_v19 = vpop.f32.mrb[78].mxu0 }
 0x261   : > { %3914 = vst [vmem:[#allocation21_spill] sm:$0xff] %v3421_v49  ;;  %3915 = vst [vmem:[#allocation27_spill] sm:$0xff] %v3423_v2  ;;  %v865_v40 = vsel %vm3919_vm13, 2, %v3892_v24  ;;  %vm3922_vm4 = vcmp.gt.f32.partialorder %v3920_v51, %v3921_v35  ;;  %v3924_v3 = vld [vmem:[#allocation44_spill] sm:$0xff]  ;;  %v3926_v56 = vld [vmem:[#allocation43_spill] sm:$0xff]  ;;  %v1038_v17 = vpop.f32.mrb[62].mxu1 }
 0x262   : > { %3916 = vst [vmem:[#allocation28_spill] sm:$0xff] %v3425_v29  ;;  %v866_v4 = vsel %vm3922_vm4, 2, %v3892_v24  ;;  %vm3925_vm5 = vcmp.gt.f32.partialorder %v3923_v63, %v3924_v3  ;;  %vm1071_vm6 = vcmp.gt.f32.partialorder %v1034_v36, %v3926_v56  ;;  %v3927_v2 = vld [vmem:[#allocation45_spill] sm:$0xff]  ;;  %v3928_v29 = vld [vmem:[#allocation47_spill] sm:$0xff]  ;;  %v3930_v35 = vld [vmem:[#allocation46_spill] sm:$0xff]  ;;  %v1278_v49 = vpop.f32.mrb[79].mxu0 }
 0x263   : > { %v867_v60 = vsel %vm3925_vm5, 2, %v3892_v24  ;;  %vm3929_vm15 = vcmp.gt.f32.partialorder %v3927_v2, %v3928_v29  ;;  %v1103_v47 = vsel %vm1071_vm6, 3, %v865_v40  ;;  %v1135_v51 = vsel %vm1071_vm6, %v1034_v36, %v3926_v56  ;;  %v3931_v31 = vld [vmem:[#allocation48_spill] sm:$0xff]  ;;  %v1040_v43 = vpop.f32.mrb[63].mxu1  ;;  %v3932_v29 = vld [vmem:[#allocation49_spill] sm:$0xff] }
 0x264   : > { %v868_v30 = vsel %vm3929_vm15, 2, %v3892_v24  ;;  %vm1072_vm12 = vcmp.gt.f32.partialorder %v1036_v62, %v3930_v35  ;;  %vm1309_vm7 = vcmp.gt.f32.partialorder %v1272_v14, %v1135_v51  ;;  %vm1073_vm0 = vcmp.gt.f32.partialorder %v1038_v17, %v3931_v31 }
 0x265   : > { %v1104_v63 = vsel %vm1072_vm12, 3, %v866_v4  ;;  %v1136_v3 = vsel %vm1072_vm12, %v1036_v62, %v3930_v35  ;;  %v1105_v25 = vsel %vm1073_vm0, 3, %v867_v60  ;;  %v1137_v2 = vsel %vm1073_vm0, %v1038_v17, %v3931_v31 }
 0x266   : > { %vm1310_vm1 = vcmp.gt.f32.partialorder %v1274_v0, %v1136_v3  ;;  %vm1074_vm2 = vcmp.gt.f32.partialorder %v1040_v43, %v3932_v29  ;;  %vm1311_vm8 = vcmp.gt.f32.partialorder %v1276_v19, %v1137_v2  ;;  %v3454_v40 = vsel %vm1309_vm7, 4, %v1103_v47  ;;  %v1440_v60 = vpop.f32.mrb[80].mxu0 }
 0x267   : > { %v1106_v24 = vsel %vm1074_vm2, 3, %v868_v30  ;;  %v1138_v36 = vsel %vm1074_vm2, %v1040_v43, %v3932_v29  ;;  %v3456_v4 = vsel %vm1309_vm7, %v1272_v14, %v1135_v51  ;;  %v3458_v56 = vsel %vm1310_vm1, 4, %v1104_v63  ;;  %v1460_v43 = vpop.f32.mrb[64].mxu1  ;;  %v1442_v30 = vpop.f32.mrb[81].mxu0  ;;  %v3936_v63 = vld [vmem:[#allocation8_spill] sm:$0xff] }
 0x268   : > { %vm1312_vm9 = vcmp.gt.f32.partialorder %v1278_v49, %v1138_v36  ;;  %v3460_v62 = vsel %vm1310_vm1, %v1274_v0, %v1136_v3  ;;  %v3462_v35 = vsel %vm1311_vm8, 4, %v1105_v25  ;;  %v3464_v31 = vsel %vm1311_vm8, %v1276_v19, %v1137_v2  ;;  %v1462_v0 = vpop.f32.mrb[65].mxu1  ;;  %v1444_v47 = vpop.f32.mrb[82].mxu0  ;;  %v3939_v29 = vld [vmem:[#allocation16_spill] sm:$0xff] }
 0x269   : > { %v3466_v17 = vsel %vm1312_vm9, 4, %v1106_v24  ;;  %v3468_v41 = vsel %vm1312_vm9, %v1278_v49, %v1138_v36  ;;  %vm1519_vm10 = vcmp.gt.f32.partialorder %v1440_v60, %v3173_v21  ;;  %vm1527_vm3 = vcmp.gt.f32.partialorder %v1460_v43, %v3253_v26  ;;  %v3940_v24 = vld [vmem:[#allocation19_spill] sm:$0xff]  ;;  %v3941_v43 = vld [vmem:[#allocation10_spill] sm:$0xff] }
 0x26a   : > { %v1551_v14 = vsel %vm1519_vm10, 5, %v3171_v18  ;;  %vm1520_vm11 = vcmp.gt.f32.partialorder %v1442_v30, %v3177_v1  ;;  %v1559_v21 = vsel %vm1527_vm3, 5, %v3251_v54  ;;  %vm1528_vm14 = vcmp.gt.f32.partialorder %v1462_v0, %v3257_v52  ;;  %v1464_v18 = vpop.f32.mrb[66].mxu1  ;;  %v1446_v1 = vpop.f32.mrb[83].mxu0 }
 0x26b   : > { %1583 = vst [vmem:[%s3474_s23] sm:$0xff] %v1551_v14  ;;  %v1552_v25 = vsel %vm1520_vm11, 5, %v3175_v53  ;;  %vm1521_vm13 = vcmp.gt.f32.partialorder %v1444_v47, %v3181_v15  ;;  %1591 = vst [vmem:[%s3474_s23 + $0x40] sm:$0xff] %v1559_v21  ;;  %v1560_v26 = vsel %vm1528_vm14, 5, %v3255_v57  ;;  %vm1529_vm4 = vcmp.gt.f32.partialorder %v1464_v18, %v3261_v5  ;;  %v1466_v53 = vpop.f32.mrb[67].mxu1  ;;  %v3942_v14 = vld [vmem:[#allocation9_spill] sm:$0xff]  ;;  %v3943_v47 = vld [vmem:[#allocation23_spill] sm:$0xff] }
 0x26c   : > { %1584 = vst [vmem:[%s3474_s23 + $0x8] sm:$0xff] %v1552_v25  ;;  %v1553_v49 = vsel %vm1521_vm13, 5, %v3179_v34  ;;  %vm1522_vm5 = vcmp.gt.f32.partialorder %v1446_v1, %v3185_v27  ;;  %1592 = vst [vmem:[%s3474_s23 + $0x48] sm:$0xff] %v1560_v26  ;;  %v1561_v54 = vsel %vm1529_vm4, 5, %v3259_v46  ;;  %vm1530_vm6 = vcmp.gt.f32.partialorder %v1466_v53, %v3265_v50  ;;  %v3944_v25 = vld [vmem:[#allocation24_spill] sm:$0xff]  ;;  %v3945_v1 = vld [vmem:[#allocation21_spill] sm:$0xff] }
 0x26d   : > { %1585 = vst [vmem:[%s3474_s23 + $0x10] sm:$0xff] %v1553_v49  ;;  %v1554_v15 = vsel %vm1522_vm5, 5, %v3183_v39  ;;  %1593 = vst [vmem:[%s3474_s23 + $0x50] sm:$0xff] %v1561_v54  ;;  %v1562_v57 = vsel %vm1530_vm6, 5, %v3263_v55  ;;  %v3946_v49 = vld [vmem:[#allocation22_spill] sm:$0xff]  ;;  %v3947_v54 = vld [vmem:[#allocation28_spill] sm:$0xff] }
 0x26e   : > { %1586 = vst [vmem:[%s3474_s23 + $0x18] sm:$0xff] %v1554_v15  ;;  %1594 = vst [vmem:[%s3474_s23 + $0x58] sm:$0xff] %v1562_v57  ;;  %v1450_v34 = vpop.f32.mrb[84].mxu0  ;;  %v3948_v15 = vld [vmem:[#allocation27_spill] sm:$0xff] }
 0x26f   : > { %vm1523_vm15 = vcmp.gt.f32.partialorder %v1450_v34, %v3213_v28  ;;  %v1470_v27 = vpop.f32.mrb[68].mxu1  ;;  %v1452_v52 = vpop.f32.mrb[85].mxu0 }
 0x270   : > { %v1555_v5 = vsel %vm1523_vm15, 5, %v3211_v7  ;;  %vm1531_vm12 = vcmp.gt.f32.partialorder %v1470_v27, %v3293_v20  ;;  %vm1524_vm7 = vcmp.gt.f32.partialorder %v1452_v52, %v3217_v61  ;;  %v1472_v39 = vpop.f32.mrb[69].mxu1  ;;  %v1454_v46 = vpop.f32.mrb[86].mxu0 }
 0x271   : > { %1587 = vst [vmem:[%s3474_s23 + $0x20] sm:$0xff] %v1555_v5  ;;  %v1563_v55 = vsel %vm1531_vm12, 5, %v3291_v59  ;;  %v1556_v50 = vsel %vm1524_vm7, 5, %v3215_v48  ;;  %vm1532_vm0 = vcmp.gt.f32.partialorder %v1472_v39, %v3297_v23  ;;  %vm1525_vm1 = vcmp.gt.f32.partialorder %v1454_v46, %v3221_v16  ;;  %v1474_v7 = vpop.f32.mrb[70].mxu1  ;;  %v1456_v28 = vpop.f32.mrb[87].mxu0 }
 0x272   : > { %1595 = vst [vmem:[%s3474_s23 + $0x60] sm:$0xff] %v1563_v55  ;;  %1588 = vst [vmem:[%s3474_s23 + $0x28] sm:$0xff] %v1556_v50  ;;  %v1564_v61 = vsel %vm1532_vm0, 5, %v3295_v8  ;;  %v1557_v20 = vsel %vm1525_vm1, 5, %v3219_v6  ;;  %vm1533_vm2 = vcmp.gt.f32.partialorder %v1474_v7, %v3301_v11  ;;  %vm1526_vm8 = vcmp.gt.f32.partialorder %v1456_v28, %v3225_v37  ;;  %v1476_v48 = vpop.f32.mrb[71].mxu1 }
 0x273   : > { %1596 = vst [vmem:[%s3474_s23 + $0x68] sm:$0xff] %v1564_v61  ;;  %1589 = vst [vmem:[%s3474_s23 + $0x30] sm:$0xff] %v1557_v20  ;;  %v1565_v16 = vsel %vm1533_vm2, 5, %v3299_v9  ;;  %v1558_v59 = vsel %vm1526_vm8, 5, %v3223_v32  ;;  %vm1534_vm9 = vcmp.gt.f32.partialorder %v1476_v48, %v3305_v13 }
 0x274   : > { %1597 = vst [vmem:[%s3474_s23 + $0x70] sm:$0xff] %v1565_v16  ;;  %1590 = vst [vmem:[%s3474_s23 + $0x38] sm:$0xff] %v1558_v59  ;;  %v1566_v6 = vsel %vm1534_vm9, 5, %v3303_v33 }
 0x275   : > { %1598 = vst [vmem:[%s3474_s23 + $0x78] sm:$0xff] %v1566_v6 }
 0x277   : > { %v1480_v8 = vpop.f32.mrb[72].mxu1 }
 0x278   : > { %vm1535_vm10 = vcmp.gt.f32.partialorder %v1480_v8, %v3333_v10  ;;  %v1482_v37 = vpop.f32.mrb[73].mxu1  ;;  %v3933_v10 = vld [vmem:[#allocation6_spill] sm:$0xff] }
 0x279   : > { %v1567_v23 = vsel %vm1535_vm10, 5, %v3331_v22  ;;  %vm1536_vm3 = vcmp.gt.f32.partialorder %v1482_v37, %v3337_v42  ;;  %v1484_v9 = vpop.f32.mrb[74].mxu1 }
 0x27a   : > { %1599 = vst [vmem:[%s3474_s23 + $0x80] sm:$0xff] %v1567_v23  ;;  %v1568_v32 = vsel %vm1536_vm3, 5, %v3335_v44  ;;  %vm1537_vm11 = vcmp.gt.f32.partialorder %v1484_v9, %v3341_v45  ;;  %v1486_v11 = vpop.f32.mrb[75].mxu1  ;;  %v3934_v44 = vld [vmem:[#allocation5_spill] sm:$0xff]  ;;  %v3935_v45 = vld [vmem:[#allocation7_spill] sm:$0xff] }
 0x27b   : > { %1600 = vst [vmem:[%s3474_s23 + $0x88] sm:$0xff] %v1568_v32  ;;  %v1569_v33 = vsel %vm1537_vm11, 5, %v3339_v38  ;;  %vm1538_vm14 = vcmp.gt.f32.partialorder %v1486_v11, %v3345_v58  ;;  %v3937_v58 = vld [vmem:[#allocation18_spill] sm:$0xff] }
 0x27c   : > { %1601 = vst [vmem:[%s3474_s23 + $0x90] sm:$0xff] %v1569_v33  ;;  %v1570_v13 = vsel %vm1538_vm14, 5, %v3343_v12  ;;  %v3938_v12 = vld [vmem:[#allocation20_spill] sm:$0xff] }
 0x27d   : > { %1602 = vst [vmem:[%s3474_s23 + $0x98] sm:$0xff] %v1570_v13 }
 0x27f   : > { %v1490_v22 = vpop.f32.mrb[76].mxu1 }
 0x280   : > { %vm1539_vm13 = vcmp.gt.f32.partialorder %v1490_v22, %v3933_v10  ;;  %v1492_v42 = vpop.f32.mrb[77].mxu1 }
 0x281   : > { %v1571_v19 = vsel %vm1539_vm13, 5, %v3934_v44  ;;  %vm1540_vm4 = vcmp.gt.f32.partialorder %v1492_v42, %v3935_v45  ;;  %v1494_v51 = vpop.f32.mrb[78].mxu1 }
 0x282   : > { %1603 = vst [vmem:[%s3474_s23 + $0xa0] sm:$0xff] %v1571_v19  ;;  %v1572_v38 = vsel %vm1540_vm4, 5, %v3936_v63  ;;  %vm1541_vm5 = vcmp.gt.f32.partialorder %v1494_v51, %v3937_v58  ;;  %v1496_v3 = vpop.f32.mrb[79].mxu1 }
 0x283   : > { %1604 = vst [vmem:[%s3474_s23 + $0xa8] sm:$0xff] %v1572_v38  ;;  %v1573_v2 = vsel %vm1541_vm5, 5, %v3938_v12  ;;  %vm1542_vm6 = vcmp.gt.f32.partialorder %v1496_v3, %v3939_v29 }
 0x284   : > { %1605 = vst [vmem:[%s3474_s23 + $0xb0] sm:$0xff] %v1573_v2  ;;  %v1574_v36 = vsel %vm1542_vm6, 5, %v3940_v24 }
 0x285   : > { %1606 = vst [vmem:[%s3474_s23 + $0xb8] sm:$0xff] %v1574_v36 }
 0x287   : > { %v1500_v60 = vpop.f32.mrb[80].mxu1 }
 0x288   : > { %vm1543_vm15 = vcmp.gt.f32.partialorder %v1500_v60, %v3941_v43  ;;  %v1502_v30 = vpop.f32.mrb[81].mxu1 }
 0x289   : > { %v1575_v0 = vsel %vm1543_vm15, 5, %v3942_v14  ;;  %vm1544_vm12 = vcmp.gt.f32.partialorder %v1502_v30, %v3943_v47  ;;  %v1504_v21 = vpop.f32.mrb[82].mxu1 }
 0x28a   : > { %1607 = vst [vmem:[%s3474_s23 + $0xc0] sm:$0xff] %v1575_v0  ;;  %v1576_v18 = vsel %vm1544_vm12, 5, %v3944_v25  ;;  %vm1545_vm7 = vcmp.gt.f32.partialorder %v1504_v21, %v3945_v1  ;;  %v1506_v26 = vpop.f32.mrb[83].mxu1 }
 0x28b   : > { %1608 = vst [vmem:[%s3474_s23 + $0xc8] sm:$0xff] %v1576_v18  ;;  %v1577_v53 = vsel %vm1545_vm7, 5, %v3946_v49  ;;  %vm1546_vm0 = vcmp.gt.f32.partialorder %v1506_v26, %v3947_v54 }
 0x28c   : > { %1609 = vst [vmem:[%s3474_s23 + $0xd0] sm:$0xff] %v1577_v53  ;;  %v1578_v57 = vsel %vm1546_vm0, 5, %v3948_v15 }
 0x28d   : > { %1610 = vst [vmem:[%s3474_s23 + $0xd8] sm:$0xff] %v1578_v57 }
 0x28f   : > { %v1510_v34 = vpop.f32.mrb[84].mxu1 }
 0x290   : > { %vm1547_vm1 = vcmp.gt.f32.partialorder %v1510_v34, %v3456_v4  ;;  %v1512_v27 = vpop.f32.mrb[85].mxu1 }
 0x291   : > { %v1579_v52 = vsel %vm1547_vm1, 5, %v3454_v40  ;;  %vm1548_vm2 = vcmp.gt.f32.partialorder %v1512_v27, %v3460_v62  ;;  %v1514_v5 = vpop.f32.mrb[86].mxu1 }
 0x292   : > { %1611 = vst [vmem:[%s3474_s23 + $0xe0] sm:$0xff] %v1579_v52  ;;  %v1580_v39 = vsel %vm1548_vm2, 5, %v3458_v56  ;;  %vm1549_vm8 = vcmp.gt.f32.partialorder %v1514_v5, %v3464_v31  ;;  %v1516_v46 = vpop.f32.mrb[87].mxu1 }
 0x293   : > { %1612 = vst [vmem:[%s3474_s23 + $0xe8] sm:$0xff] %v1580_v39  ;;  %v1581_v40 = vsel %vm1549_vm8, 5, %v3462_v35  ;;  %vm1550_vm9 = vcmp.gt.f32.partialorder %v1516_v46, %v3468_v41 }
 0x294   : > { %1613 = vst [vmem:[%s3474_s23 + $0xf0] sm:$0xff] %v1581_v40  ;;  %v1582_v4 = vsel %vm1550_vm9, 5, %v3466_v17 }
 0x295   : > { %1614 = vst [vmem:[%s3474_s23 + $0xf8] sm:$0xff] %v1582_v4 }
 0x296   : > { %1904 = shalt.err (!%p1901_p3)
}
 0x297   : > { %s1905_s9 = scalar_lea.hbm %s3567_s29, 4096  ;;  %s1909_s13 = scalar_lea.hbm %s3624_s4, 8192 }
 0x298   : > { %p1906_p4 = scmp.ne.s32.totalorder %s3567_s29, %s1905_s9  ;;  %p1910_p9 = scmp.lt.u32.totalorder %s3567_s29, %s3624_s4 }
 0x299   : > { %p1911_p10 = scmp.lt.u32.totalorder %s1909_s13, %s1905_s9  ;;  %p1913_p12 = scmp.lt.u32.totalorder %s1905_s9, %s3567_s29 }
 0x29a   : > { %p1907_p7 = pnand %p1906_p4, %p2023_p5 }
 0x29b   : > { %p1912_p11 = por %p1911_p10, %p1910_p9 }
 0x29c   : > { %p1908_p8 = pneg %p1907_p7 }
 0x29d   : > { %p1914_p13 = por %p1913_p12, %p1912_p11 }
 0x29f   : > { %p1915_p0 = pnand %p1914_p13, %p1908_p8 }
 0x2a1   : > { %1918 = shalt.err (!%p1915_p0)
}
 0x2a2   : > { %s1958_s22 = smov 256   ;;  %s1959_s23 = smov 16  }
 0x2a3   : > { %1808 = dma.vmem_to_hbm [thread:$0]  (%p2023_p5), %s3569_s28, 4096, %s3567_s29, %s3579_s30, %s1958_s22, %s1958_s22, %s1959_s23  }
 0x2a4 PF: > { %p1814_p1 = scmp.ge.s32.totalorder %s1953_s18, 2  ;;  %s1645_s27 = sand.u32 1, %s1941_s15  }
 0x2a5   : > { %s1646_s19 = scalar_lea.sflag [#allocation3], %s1645_s27 }
 0x2a6   : > { %p1811_p2 = pnand %p1814_p1, %p2027_p6 }
 0x2a8   : > { %1936 = dma.done.wait (!%p1811_p2), %s1646_s19, 4096  }
 0x2a9   : > { %1938 = vsyncadd (!%p1811_p2), %s1646_s19, 4294963200  ;;  %p14_p3 = scmp.ge.s32.totalorder %s2010_s21, 4   ;;  %s3949_s15 = smov %s1945_s16 }
 0x2aa   : > { %s3950_s16 = smov %s1949_s17  ;;  %s3951_s17 = smov %s2021_s24 }
 0x2ab   : > { %s3952_s18 = smov %s2010_s21  ;;  %16 = sbr.rel (!%p14_p3) target bundleno = 3 (0x3), region = 71 }
 0x2b2   :  { %1651 = vsyncpa [#allocation3], 1 }
 0x2b3   :  { %1653 = vsyncpa [#allocation3 + $0x1], 1 }

</bundles_post_ra>
